<compile_context>
chip_gen: v7x
topology: tpu7x:2x2x1
jax: 0.10.0
libtpu: 0.0.40
codegen_flags: <defaults>
</compile_context>

<pallas_src>
import functools
import math
import numpy as np
import jax
import jax.numpy as jnp
from jax.experimental import pallas as pl
from jax.experimental.pallas import tpu as pltpu


# ----------------------------- fused sublayer kernels ------------------------

def _ln_f32(x, g, b):
    mean = jnp.mean(x, axis=-1, keepdims=True)
    var = jnp.mean((x - mean) ** 2, axis=-1, keepdims=True)
    return g * (x - mean) * jax.lax.rsqrt(var + 1e-6) + b


def _attn_heads(qb, kb, vb, mask, h, dk):
    """qb/kb/vb: bf16 (Tq/Tk, D); mask: f32 (Tq, Tk).  Returns f32 (Tq, D)."""
    ctx_heads = []
    for i in range(h):
        sl = slice(i * dk, (i + 1) * dk)
        qh, kh, vh = qb[:, sl], kb[:, sl], vb[:, sl]
        s = jax.lax.dot_general(qh, kh, (((1,), (1,)), ((), ())),
                                preferred_element_type=jnp.float32)
        s = jnp.where(mask > 0.0, s, jnp.float32(-1e9))
        s = s - jnp.max(s, axis=-1, keepdims=True)
        p = jnp.exp(s)
        p = p * pl.reciprocal(jnp.sum(p, axis=-1, keepdims=True), approx=True)
        ctx_heads.append(jnp.dot(p.astype(jnp.bfloat16), vh,
                                 preferred_element_type=jnp.float32))
    return jnp.concatenate(ctx_heads, axis=-1)


def _self_attn_kernel(x_ref, mask_ref, g_ref, b_ref, wqkv_ref, bqkv_ref,
                      wo_ref, bo_ref, o_ref, *, h, dk):
    x = x_ref[0]                                             # (T, D) f32
    D = x.shape[-1]
    y = _ln_f32(x, g_ref[...], b_ref[...])                   # pre-norm (f32)
    qkv = jnp.dot(y.astype(jnp.bfloat16), wqkv_ref[...],     # fused QKV (MXU)
                  preferred_element_type=jnp.float32) + bqkv_ref[...]
    qb = (qkv[:, :D] * jnp.float32(1.0 / math.sqrt(dk))).astype(jnp.bfloat16)
    kb = qkv[:, D:2 * D].astype(jnp.bfloat16)
    vb = qkv[:, 2 * D:].astype(jnp.bfloat16)
    ctx = _attn_heads(qb, kb, vb, mask_ref[0], h, dk)        # (T, D) f32
    out = jnp.dot(ctx.astype(jnp.bfloat16), wo_ref[...],
                  preferred_element_type=jnp.float32) + bo_ref[...]
    o_ref[0] = (x + out).astype(o_ref.dtype)                 # residual


def _cross_attn_kernel(x_ref, mem_ref, mask_ref, g_ref, b_ref, wq_ref, bq_ref,
                       wkv_ref, bkv_ref, wo_ref, bo_ref, o_ref, *, h, dk):
    x = x_ref[0]                                             # (Tq, D) f32
    mem = mem_ref[0]                                         # (Tk, D) f32
    D = x.shape[-1]
    y = _ln_f32(x, g_ref[...], b_ref[...])
    q = jnp.dot(y.astype(jnp.bfloat16), wq_ref[...],
                preferred_element_type=jnp.float32) + bq_ref[...]
    kv = jnp.dot(mem.astype(jnp.bfloat16), wkv_ref[...],     # fused KV (MXU)
                 preferred_element_type=jnp.float32) + bkv_ref[...]
    qb = (q * jnp.float32(1.0 / math.sqrt(dk))).astype(jnp.bfloat16)
    kb = kv[:, :D].astype(jnp.bfloat16)
    vb = kv[:, D:].astype(jnp.bfloat16)
    ctx = _attn_heads(qb, kb, vb, mask_ref[0], h, dk)
    out = jnp.dot(ctx.astype(jnp.bfloat16), wo_ref[...],
                  preferred_element_type=jnp.float32) + bo_ref[...]
    o_ref[0] = (x + out).astype(o_ref.dtype)


def _ffn_sublayer_kernel(x_ref, g_ref, b_ref, w1_ref, b1_ref, w2_ref, b2_ref,
                         o_ref):
    x = x_ref[...]                                           # (tm, D) f32
    y = _ln_f32(x, g_ref[...], b_ref[...])
    hdn = jnp.dot(y.astype(jnp.bfloat16), w1_ref[...],
                  preferred_element_type=jnp.float32) + b1_ref[...]
    hdn = jnp.maximum(hdn, 0.0)                              # ReLU in f32
    out = jnp.dot(hdn.astype(jnp.bfloat16), w2_ref[...],
                  preferred_element_type=jnp.float32) + b2_ref[...]
    o_ref[...] = (x + out).astype(o_ref.dtype)               # residual


def _layernorm_kernel(x_ref, g_ref, b_ref, o_ref):
    o_ref[...] = _ln_f32(x_ref[...], g_ref[...], b_ref[...]).astype(o_ref.dtype)


# ----------------------------- pallas_call wrappers --------------------------

_PARALLEL_1D = pltpu.CompilerParams(dimension_semantics=("parallel",))


def self_attn_sublayer(x, mask_f, p, h):
    """x: (B, T, D); mask_f: (B, T, T) f32.  Returns x + SelfAttn(LN(x))."""
    B, T, D = x.shape
    dk = D // h
    return pl.pallas_call(
        functools.partial(_self_attn_kernel, h=h, dk=dk),
        out_shape=jax.ShapeDtypeStruct((B, T, D), jnp.float32),
        grid=(B,),
        in_specs=[pl.BlockSpec((1, T, D), lambda b: (b, 0, 0)),
                  pl.BlockSpec((1, T, T), lambda b: (b, 0, 0)),
                  pl.BlockSpec((1, D), lambda b: (0, 0)),
                  pl.BlockSpec((1, D), lambda b: (0, 0)),
                  pl.BlockSpec((D, 3 * D), lambda b: (0, 0)),
                  pl.BlockSpec((1, 3 * D), lambda b: (0, 0)),
                  pl.BlockSpec((D, D), lambda b: (0, 0)),
                  pl.BlockSpec((1, D), lambda b: (0, 0))],
        out_specs=pl.BlockSpec((1, T, D), lambda b: (b, 0, 0)),
        compiler_params=_PARALLEL_1D,
    )(x, mask_f, p["ln_g"].reshape(1, D), p["ln_b"].reshape(1, D),
      p["wqkv"], p["bqkv"].reshape(1, 3 * D), p["wo"], p["bo"].reshape(1, D))


def cross_attn_sublayer(x, memory, mask_f, p, h):
    """x: (B, Tq, D); memory: (B, Tk, D); mask_f: (B, Tq, Tk) f32."""
    B, Tq, D = x.shape
    Tk = memory.shape[1]
    dk = D // h
    return pl.pallas_call(
        functools.partial(_cross_attn_kernel, h=h, dk=dk),
        out_shape=jax.ShapeDtypeStruct((B, Tq, D), jnp.float32),
        grid=(B,),
        in_specs=[pl.BlockSpec((1, Tq, D), lambda b: (b, 0, 0)),
                  pl.BlockSpec((1, Tk, D), lambda b: (b, 0, 0)),
                  pl.BlockSpec((1, Tq, Tk), lambda b: (b, 0, 0)),
                  pl.BlockSpec((1, D), lambda b: (0, 0)),
                  pl.BlockSpec((1, D), lambda b: (0, 0)),
                  pl.BlockSpec((D, D), lambda b: (0, 0)),
                  pl.BlockSpec((1, D), lambda b: (0, 0)),
                  pl.BlockSpec((D, 2 * D), lambda b: (0, 0)),
                  pl.BlockSpec((1, 2 * D), lambda b: (0, 0)),
                  pl.BlockSpec((D, D), lambda b: (0, 0)),
                  pl.BlockSpec((1, D), lambda b: (0, 0))],
        out_specs=pl.BlockSpec((1, Tq, D), lambda b: (b, 0, 0)),
        compiler_params=_PARALLEL_1D,
    )(x, memory, mask_f, p["ln_g"].reshape(1, D), p["ln_b"].reshape(1, D),
      p["wq"], p["bq"].reshape(1, D), p["wkv"], p["bkv"].reshape(1, 2 * D),
      p["wo"], p["bo"].reshape(1, D))


def _m_tile(M):
    return M if M <= 512 else 512


def ffn_sublayer(x, p):
    """x: (B, T, D).  Returns x + FFN(LN(x)); tiled over M = B*T."""
    B, T, D = x.shape
    F = p["w1"].shape[1]
    M = B * T
    tm = _m_tile(M)
    y = pl.pallas_call(
        _ffn_sublayer_kernel,
        out_shape=jax.ShapeDtypeStruct((M, D), jnp.float32),
        grid=(pl.cdiv(M, tm),),
        in_specs=[pl.BlockSpec((tm, D), lambda i: (i, 0)),
                  pl.BlockSpec((1, D), lambda i: (0, 0)),
                  pl.BlockSpec((1, D), lambda i: (0, 0)),
                  pl.BlockSpec((D, F), lambda i: (0, 0)),
                  pl.BlockSpec((1, F), lambda i: (0, 0)),
                  pl.BlockSpec((F, D), lambda i: (0, 0)),
                  pl.BlockSpec((1, D), lambda i: (0, 0))],
        out_specs=pl.BlockSpec((tm, D), lambda i: (i, 0)),
        compiler_params=_PARALLEL_1D,
    )(x.reshape(M, D), p["ln_g"].reshape(1, D), p["ln_b"].reshape(1, D),
      p["w1"], p["b1"].reshape(1, F), p["w2"], p["b2"].reshape(1, D))
    return y.reshape(B, T, D)


def layer_norm(x, g, b):
    """Final encoder/decoder LayerNorm, tiled over M = B*T."""
    B, T, D = x.shape
    M = B * T
    tm = _m_tile(M)
    y = pl.pallas_call(
        _layernorm_kernel,
        out_shape=jax.ShapeDtypeStruct((M, D), jnp.float32),
        grid=(pl.cdiv(M, tm),),
        in_specs=[pl.BlockSpec((tm, D), lambda i: (i, 0)),
                  pl.BlockSpec((1, D), lambda i: (0, 0)),
                  pl.BlockSpec((1, D), lambda i: (0, 0))],
        out_specs=pl.BlockSpec((tm, D), lambda i: (i, 0)),
        compiler_params=_PARALLEL_1D,
    )(x.reshape(M, D), g.reshape(1, D), b.reshape(1, D))
    return y.reshape(B, T, D)


# ----------------------------- model wiring (glue) ---------------------------

def encoder_layer(p, x, src_mask_f, h):
    x = self_attn_sublayer(x, src_mask_f, p["self"], h)
    x = ffn_sublayer(x, p["ffn"])
    return x


def decoder_layer(p, x, memory, cross_mask_f, tgt_mask_f, h):
    x = self_attn_sublayer(x, tgt_mask_f, p["self"], h)
    x = cross_attn_sublayer(x, memory, cross_mask_f, p["cross"], h)
    x = ffn_sublayer(x, p["ffn"])
    return x


def positional_encoding(max_len, d_model):
    pos = np.arange(max_len, dtype=np.float32)[:, None]
    div = np.exp(np.arange(0, d_model, 2, dtype=np.float32)
                 * -(math.log(10000.0) / d_model))
    pe = np.zeros((max_len, d_model), dtype=np.float32)
    pe[:, 0::2] = np.sin(pos * div)
    pe[:, 1::2] = np.cos(pos * div)
    return jnp.asarray(pe)


def embed(tokens, table, pe, d_model):
    # TODO(synk): embedding gather + PE add stay in plain JAX (data-dependent
    # gather; tiny relative to the fused sublayer kernels).
    T = tokens.shape[1]
    return table[tokens] * jnp.float32(math.sqrt(d_model)) + pe[:T][None]


def seq2seq_tf_forward(params, input_seqs, output_seqs, src_mask, tgt_mask,
                       *, h, d_model):
    pe = params["pe"]
    B, S = input_seqs.shape
    T = output_seqs.shape[1]
    # Per-batch masks (no per-head broadcast; tiny compared to activations).
    src_self_mask = jnp.broadcast_to(src_mask, (B, S, S)).astype(jnp.float32)
    tgt_self_mask = jnp.broadcast_to(tgt_mask, (B, T, T)).astype(jnp.float32)
    cross_mask = jnp.broadcast_to(src_mask, (B, T, S)).astype(jnp.float32)

    # --- encode ---
    x = embed(input_seqs, params["src_emb"], pe, d_model)
    for lp in params["enc_layers"]:
        x = encoder_layer(lp, x, src_self_mask, h)
    memory = layer_norm(x, params["enc_norm_g"], params["enc_norm_b"])

    # --- decode ---
    y = embed(output_seqs, params["tgt_emb"], pe, d_model)
    for lp in params["dec_layers"]:
        y = decoder_layer(lp, y, memory, cross_mask, tgt_self_mask, h)
    return layer_norm(y, params["dec_norm_g"], params["dec_norm_b"])


# ----------------------------- parameter init --------------------------------

def init_params(key, src_vocab, tgt_vocab, d_model, d_ff, h, N, max_len=64):
    counter = [0]

    def nxt():
        counter[0] += 1
        return jax.random.fold_in(key, counter[0])

    def nrm(shape, scale=0.02, dtype=jnp.bfloat16):
        return (jax.random.normal(nxt(), shape, jnp.float32) * scale).astype(dtype)

    ones = jnp.ones((d_model,), jnp.float32)
    zeros = jnp.zeros((d_model,), jnp.float32)

    def self_attn_params():
        return {"ln_g": ones, "ln_b": zeros,
                "wqkv": nrm((d_model, 3 * d_model)),            # bf16, fused QKV
                "bqkv": jnp.zeros((3 * d_model,), jnp.float32),
                "wo": nrm((d_model, d_model)),
                "bo": jnp.zeros((d_model,), jnp.float32)}

    def cross_attn_params():
        return {"ln_g": ones, "ln_b": zeros,
                "wq": nrm((d_model, d_model)),
                "bq": jnp.zeros((d_model,), jnp.float32),
                "wkv": nrm((d_model, 2 * d_model)),             # bf16, fused KV
                "bkv": jnp.zeros((2 * d_model,), jnp.float32),
                "wo": nrm((d_model, d_model)),
                "bo": jnp.zeros((d_model,), jnp.float32)}

    def ffn_params():
        return {"ln_g": ones, "ln_b": zeros,
                "w1": nrm((d_model, d_ff)),
                "b1": jnp.zeros((d_ff,), jnp.float32),
                "w2": nrm((d_ff, d_model)),
                "b2": jnp.zeros((d_model,), jnp.float32)}

    enc_layers = [{"self": self_attn_params(), "ffn": ffn_params()}
                  for _ in range(N)]
    dec_layers = [{"self": self_attn_params(), "cross": cross_attn_params(),
                   "ffn": ffn_params()} for _ in range(N)]

    return {
        "src_emb": nrm((src_vocab, d_model), 1.0, jnp.float32),
        "tgt_emb": nrm((tgt_vocab, d_model), 1.0, jnp.float32),
        "pe": positional_encoding(max_len, d_model),
        "enc_layers": enc_layers, "dec_layers": dec_layers,
        "enc_norm_g": ones, "enc_norm_b": zeros,
        "dec_norm_g": ones, "dec_norm_b": zeros,
        # TODO(synk): self.proj + log_softmax live in generator(); forward() never calls it.
    }


# ----------------------------- demo ------------------------------------------

if __name__ == "__main__":
    SRC_VOCAB, TGT_VOCAB = 50, 60
    D_MODEL, D_FF, H, N_LAYERS = 32, 64, 4, 2
    B, S_SRC, T_TGT = 2, 8, 8
    PAD = 0

    key = jax.random.PRNGKey(0)
    k_src, k_tgt, k_param = jax.random.split(key, 3)

    src = jax.random.randint(k_src, (B, S_SRC), 1, SRC_VOCAB, dtype=jnp.int32)
    tgt = jax.random.randint(k_tgt, (B, T_TGT), 1, TGT_VOCAB, dtype=jnp.int32)
    # pad the tail of the second example to exercise the masks
    src = src.at[1, -2:].set(PAD)
    tgt = tgt.at[1, -3:].set(PAD)

    src_pad = (src != PAD)
    tgt_pad = (tgt != PAD)
    src_mask = src_pad[:, None, :]                                  # (B, 1, S_src)
    subsequent = jnp.tril(jnp.ones((T_TGT, T_TGT), dtype=bool))
    tgt_mask = tgt_pad[:, None, :] & subsequent[None]               # (B, T_tgt, T_tgt)

    params = init_params(k_param, SRC_VOCAB, TGT_VOCAB, D_MODEL, D_FF, H, N_LAYERS)

    fwd = jax.jit(lambda p, a, b, sm, tm: seq2seq_tf_forward(
        p, a, b, sm, tm, h=H, d_model=D_MODEL))

    out = fwd(params, src, tgt, src_mask, tgt_mask)
    jax.block_until_ready(out)

    assert out.shape == (B, T_TGT, D_MODEL)
    assert bool(jnp.all(jnp.isfinite(out)))
    print("KERNEL_OK")
</pallas_src>

<mosaic_0001>
module attributes {stable_mosaic.version = 11 : i64} {
  func.func @_self_attn_kernel(%arg0: i32, %arg1: memref<1x8x32xf32, #tpu.memory_space<vmem>>, %arg2: memref<1x8x8xf32, #tpu.memory_space<vmem>>, %arg3: memref<1x32xf32, #tpu.memory_space<vmem>>, %arg4: memref<1x32xf32, #tpu.memory_space<vmem>>, %arg5: memref<32x96xbf16, #tpu.memory_space<vmem>>, %arg6: memref<1x96xf32, #tpu.memory_space<vmem>>, %arg7: memref<32x32xbf16, #tpu.memory_space<vmem>>, %arg8: memref<1x32xf32, #tpu.memory_space<vmem>>, %arg9: memref<1x8x32xf32, #tpu.memory_space<vmem>>) attributes {dimension_semantics = [#tpu.dimension_semantics<parallel>], iteration_bounds = array<i64: 2>, scalar_prefetch = 0 : i64, scratch_operands = 0 : i64, tpu.core_type = #tpu.core_type<tc>, window_params = [{transform_indices = @transform_0, window_bounds = array<i64: 1, 8, 32>}, {transform_indices = @transform_1, window_bounds = array<i64: 1, 8, 8>}, {pipeline_mode = #tpu.pipeline_mode<synchronous>, transform_indices = @transform_2, window_bounds = array<i64: 1, 32>}, {pipeline_mode = #tpu.pipeline_mode<synchronous>, transform_indices = @transform_3, window_bounds = array<i64: 1, 32>}, {pipeline_mode = #tpu.pipeline_mode<synchronous>, transform_indices = @transform_4, window_bounds = array<i64: 32, 96>}, {pipeline_mode = #tpu.pipeline_mode<synchronous>, transform_indices = @transform_5, window_bounds = array<i64: 1, 96>}, {pipeline_mode = #tpu.pipeline_mode<synchronous>, transform_indices = @transform_6, window_bounds = array<i64: 32, 32>}, {pipeline_mode = #tpu.pipeline_mode<synchronous>, transform_indices = @transform_7, window_bounds = array<i64: 1, 32>}, {transform_indices = @transform_8, window_bounds = array<i64: 1, 8, 32>}]} {
    %c0 = arith.constant 0 : index
    %c0_0 = arith.constant 0 : index
    %c0_1 = arith.constant 0 : index
    %0 = vector.load %arg1[%c0, %c0_0, %c0_1] : memref<1x8x32xf32, #tpu.memory_space<vmem>>, vector<1x8x32xf32>
    %1 = vector.shape_cast %0 : vector<1x8x32xf32> to vector<8x32xf32>
    %c0_2 = arith.constant 0 : index
    %c0_3 = arith.constant 0 : index
    %2 = vector.load %arg3[%c0_2, %c0_3] : memref<1x32xf32, #tpu.memory_space<vmem>>, vector<1x32xf32>
    %c0_4 = arith.constant 0 : index
    %c0_5 = arith.constant 0 : index
    %3 = vector.load %arg4[%c0_4, %c0_5] : memref<1x32xf32, #tpu.memory_space<vmem>>, vector<1x32xf32>
    %cst = arith.constant dense<0.000000e+00> : vector<8xf32>
    %4 = vector.multi_reduction <add>, %1, %cst [1] : vector<8x32xf32> to vector<8xf32>
    %5 = vector.shape_cast %4 : vector<8xf32> to vector<8x1xf32>
    %cst_6 = arith.constant 3.200000e+01 : f32
    %6 = vector.broadcast %cst_6 : f32 to vector<8x1xf32>
    %7 = arith.divf %5, %6 : vector<8x1xf32>
    %8 = vector.broadcast %7 : vector<8x1xf32> to vector<8x32xf32>
    %9 = arith.subf %1, %8 : vector<8x32xf32>
    %10 = arith.mulf %9, %9 : vector<8x32xf32>
    %cst_7 = arith.constant dense<0.000000e+00> : vector<8xf32>
    %11 = vector.multi_reduction <add>, %10, %cst_7 [1] : vector<8x32xf32> to vector<8xf32>
    %12 = vector.shape_cast %11 : vector<8xf32> to vector<8x1xf32>
    %cst_8 = arith.constant 3.200000e+01 : f32
    %13 = vector.broadcast %cst_8 : f32 to vector<8x1xf32>
    %14 = arith.divf %12, %13 : vector<8x1xf32>
    %15 = vector.broadcast %7 : vector<8x1xf32> to vector<8x32xf32>
    %16 = arith.subf %1, %15 : vector<8x32xf32>
    %17 = vector.broadcast %2 : vector<1x32xf32> to vector<8x32xf32>
    %18 = arith.mulf %17, %16 : vector<8x32xf32>
    %cst_9 = arith.constant 9.99999997E-7 : f32
    %19 = vector.broadcast %cst_9 : f32 to vector<8x1xf32>
    %20 = arith.addf %14, %19 : vector<8x1xf32>
    %21 = math.rsqrt %20 : vector<8x1xf32>
    %22 = vector.broadcast %21 : vector<8x1xf32> to vector<8x32xf32>
    %23 = arith.mulf %18, %22 : vector<8x32xf32>
    %24 = vector.broadcast %3 : vector<1x32xf32> to vector<8x32xf32>
    %25 = arith.addf %23, %24 : vector<8x32xf32>
    %26 = arith.truncf %25 : vector<8x32xf32> to vector<8x32xbf16>
    %c0_10 = arith.constant 0 : index
    %c0_11 = arith.constant 0 : index
    %27 = vector.load %arg5[%c0_10, %c0_11] : memref<32x96xbf16, #tpu.memory_space<vmem>>, vector<32x96xbf16>
    %cst_12 = arith.constant dense<0.000000e+00> : vector<8x96xf32>
    %28 = tpu.matmul %26, %27, %cst_12 {dimension_numbers = #tpu.dot_dimension_numbers<[1], [0], [0], [1], [0, 0, 1, 1], [], []>} : vector<8x32xbf16>, vector<32x96xbf16>, vector<8x96xf32> -> vector<8x96xf32>
    %c0_13 = arith.constant 0 : index
    %c0_14 = arith.constant 0 : index
    %29 = vector.load %arg6[%c0_13, %c0_14] : memref<1x96xf32, #tpu.memory_space<vmem>>, vector<1x96xf32>
    %30 = vector.broadcast %29 : vector<1x96xf32> to vector<8x96xf32>
    %31 = arith.addf %28, %30 : vector<8x96xf32>
    %32 = vector.extract_strided_slice %31 {offsets = [0, 0], sizes = [8, 32], strides = [1, 1]} : vector<8x96xf32> to vector<8x32xf32>
    %cst_15 = arith.constant 0.353553385 : f32
    %33 = vector.broadcast %cst_15 : f32 to vector<8x32xf32>
    %34 = arith.mulf %32, %33 : vector<8x32xf32>
    %35 = arith.truncf %34 : vector<8x32xf32> to vector<8x32xbf16>
    %36 = vector.extract_strided_slice %31 {offsets = [0, 32], sizes = [8, 32], strides = [1, 1]} : vector<8x96xf32> to vector<8x32xf32>
    %37 = arith.truncf %36 : vector<8x32xf32> to vector<8x32xbf16>
    %38 = vector.extract_strided_slice %31 {offsets = [0, 64], sizes = [8, 32], strides = [1, 1]} : vector<8x96xf32> to vector<8x32xf32>
    %39 = arith.truncf %38 : vector<8x32xf32> to vector<8x32xbf16>
    %c0_16 = arith.constant 0 : index
    %c0_17 = arith.constant 0 : index
    %c0_18 = arith.constant 0 : index
    %40 = vector.load %arg2[%c0_16, %c0_17, %c0_18] : memref<1x8x8xf32, #tpu.memory_space<vmem>>, vector<1x8x8xf32>
    %41 = vector.shape_cast %40 : vector<1x8x8xf32> to vector<8x8xf32>
    %42 = vector.extract_strided_slice %35 {offsets = [0, 0], sizes = [8, 8], strides = [1, 1]} : vector<8x32xbf16> to vector<8x8xbf16>
    %43 = vector.extract_strided_slice %37 {offsets = [0, 0], sizes = [8, 8], strides = [1, 1]} : vector<8x32xbf16> to vector<8x8xbf16>
    %44 = vector.extract_strided_slice %39 {offsets = [0, 0], sizes = [8, 8], strides = [1, 1]} : vector<8x32xbf16> to vector<8x8xbf16>
    %cst_19 = arith.constant dense<0.000000e+00> : vector<8x8xf32>
    %45 = tpu.matmul %42, %43, %cst_19 {dimension_numbers = #tpu.dot_dimension_numbers<[1], [1], [0], [0], [0, 0, 1, 0], [], []>} : vector<8x8xbf16>, vector<8x8xbf16>, vector<8x8xf32> -> vector<8x8xf32>
    %cst_20 = arith.constant 0.000000e+00 : f32
    %46 = vector.broadcast %cst_20 : f32 to vector<8x8xf32>
    %47 = arith.cmpf ogt, %41, %46 : vector<8x8xf32>
    %cst_21 = arith.constant -1.000000e+09 : f32
    %48 = vector.broadcast %cst_21 : f32 to vector<8x8xf32>
    %49 = arith.select %47, %45, %48 : vector<8x8xi1>, vector<8x8xf32>
    %cst_22 = arith.constant dense<0xFF800000> : vector<8xf32>
    %50 = vector.multi_reduction <maximumf>, %49, %cst_22 [1] : vector<8x8xf32> to vector<8xf32>
    %51 = vector.shape_cast %50 : vector<8xf32> to vector<8x1xf32>
    %52 = vector.broadcast %51 : vector<8x1xf32> to vector<8x8xf32>
    %53 = arith.subf %49, %52 : vector<8x8xf32>
    %54 = math.exp %53 : vector<8x8xf32>
    %cst_23 = arith.constant dense<0.000000e+00> : vector<8xf32>
    %55 = vector.multi_reduction <add>, %54, %cst_23 [1] : vector<8x8xf32> to vector<8xf32>
    %56 = vector.shape_cast %55 : vector<8xf32> to vector<8x1xf32>
    %57 = tpu.reciprocal %56 {approx = true} : vector<8x1xf32> -> vector<8x1xf32>
    %58 = vector.broadcast %57 : vector<8x1xf32> to vector<8x8xf32>
    %59 = arith.mulf %54, %58 : vector<8x8xf32>
    %60 = arith.truncf %59 : vector<8x8xf32> to vector<8x8xbf16>
    %cst_24 = arith.constant dense<0.000000e+00> : vector<8x8xf32>
    %61 = tpu.matmul %60, %44, %cst_24 {dimension_numbers = #tpu.dot_dimension_numbers<[1], [0], [0], [1], [0, 0, 1, 1], [], []>} : vector<8x8xbf16>, vector<8x8xbf16>, vector<8x8xf32> -> vector<8x8xf32>
    %62 = vector.extract_strided_slice %35 {offsets = [0, 8], sizes = [8, 8], strides = [1, 1]} : vector<8x32xbf16> to vector<8x8xbf16>
    %63 = vector.extract_strided_slice %37 {offsets = [0, 8], sizes = [8, 8], strides = [1, 1]} : vector<8x32xbf16> to vector<8x8xbf16>
    %64 = vector.extract_strided_slice %39 {offsets = [0, 8], sizes = [8, 8], strides = [1, 1]} : vector<8x32xbf16> to vector<8x8xbf16>
    %cst_25 = arith.constant dense<0.000000e+00> : vector<8x8xf32>
    %65 = tpu.matmul %62, %63, %cst_25 {dimension_numbers = #tpu.dot_dimension_numbers<[1], [1], [0], [0], [0, 0, 1, 0], [], []>} : vector<8x8xbf16>, vector<8x8xbf16>, vector<8x8xf32> -> vector<8x8xf32>
    %cst_26 = arith.constant 0.000000e+00 : f32
    %66 = vector.broadcast %cst_26 : f32 to vector<8x8xf32>
    %67 = arith.cmpf ogt, %41, %66 : vector<8x8xf32>
    %cst_27 = arith.constant -1.000000e+09 : f32
    %68 = vector.broadcast %cst_27 : f32 to vector<8x8xf32>
    %69 = arith.select %67, %65, %68 : vector<8x8xi1>, vector<8x8xf32>
    %cst_28 = arith.constant dense<0xFF800000> : vector<8xf32>
    %70 = vector.multi_reduction <maximumf>, %69, %cst_28 [1] : vector<8x8xf32> to vector<8xf32>
    %71 = vector.shape_cast %70 : vector<8xf32> to vector<8x1xf32>
    %72 = vector.broadcast %71 : vector<8x1xf32> to vector<8x8xf32>
    %73 = arith.subf %69, %72 : vector<8x8xf32>
    %74 = math.exp %73 : vector<8x8xf32>
    %cst_29 = arith.constant dense<0.000000e+00> : vector<8xf32>
    %75 = vector.multi_reduction <add>, %74, %cst_29 [1] : vector<8x8xf32> to vector<8xf32>
    %76 = vector.shape_cast %75 : vector<8xf32> to vector<8x1xf32>
    %77 = tpu.reciprocal %76 {approx = true} : vector<8x1xf32> -> vector<8x1xf32>
    %78 = vector.broadcast %77 : vector<8x1xf32> to vector<8x8xf32>
    %79 = arith.mulf %74, %78 : vector<8x8xf32>
    %80 = arith.truncf %79 : vector<8x8xf32> to vector<8x8xbf16>
    %cst_30 = arith.constant dense<0.000000e+00> : vector<8x8xf32>
    %81 = tpu.matmul %80, %64, %cst_30 {dimension_numbers = #tpu.dot_dimension_numbers<[1], [0], [0], [1], [0, 0, 1, 1], [], []>} : vector<8x8xbf16>, vector<8x8xbf16>, vector<8x8xf32> -> vector<8x8xf32>
    %82 = vector.extract_strided_slice %35 {offsets = [0, 16], sizes = [8, 8], strides = [1, 1]} : vector<8x32xbf16> to vector<8x8xbf16>
    %83 = vector.extract_strided_slice %37 {offsets = [0, 16], sizes = [8, 8], strides = [1, 1]} : vector<8x32xbf16> to vector<8x8xbf16>
    %84 = vector.extract_strided_slice %39 {offsets = [0, 16], sizes = [8, 8], strides = [1, 1]} : vector<8x32xbf16> to vector<8x8xbf16>
    %cst_31 = arith.constant dense<0.000000e+00> : vector<8x8xf32>
    %85 = tpu.matmul %82, %83, %cst_31 {dimension_numbers = #tpu.dot_dimension_numbers<[1], [1], [0], [0], [0, 0, 1, 0], [], []>} : vector<8x8xbf16>, vector<8x8xbf16>, vector<8x8xf32> -> vector<8x8xf32>
    %cst_32 = arith.constant 0.000000e+00 : f32
    %86 = vector.broadcast %cst_32 : f32 to vector<8x8xf32>
    %87 = arith.cmpf ogt, %41, %86 : vector<8x8xf32>
    %cst_33 = arith.constant -1.000000e+09 : f32
    %88 = vector.broadcast %cst_33 : f32 to vector<8x8xf32>
    %89 = arith.select %87, %85, %88 : vector<8x8xi1>, vector<8x8xf32>
    %cst_34 = arith.constant dense<0xFF800000> : vector<8xf32>
    %90 = vector.multi_reduction <maximumf>, %89, %cst_34 [1] : vector<8x8xf32> to vector<8xf32>
    %91 = vector.shape_cast %90 : vector<8xf32> to vector<8x1xf32>
    %92 = vector.broadcast %91 : vector<8x1xf32> to vector<8x8xf32>
    %93 = arith.subf %89, %92 : vector<8x8xf32>
    %94 = math.exp %93 : vector<8x8xf32>
    %cst_35 = arith.constant dense<0.000000e+00> : vector<8xf32>
    %95 = vector.multi_reduction <add>, %94, %cst_35 [1] : vector<8x8xf32> to vector<8xf32>
    %96 = vector.shape_cast %95 : vector<8xf32> to vector<8x1xf32>
    %97 = tpu.reciprocal %96 {approx = true} : vector<8x1xf32> -> vector<8x1xf32>
    %98 = vector.broadcast %97 : vector<8x1xf32> to vector<8x8xf32>
    %99 = arith.mulf %94, %98 : vector<8x8xf32>
    %100 = arith.truncf %99 : vector<8x8xf32> to vector<8x8xbf16>
    %cst_36 = arith.constant dense<0.000000e+00> : vector<8x8xf32>
    %101 = tpu.matmul %100, %84, %cst_36 {dimension_numbers = #tpu.dot_dimension_numbers<[1], [0], [0], [1], [0, 0, 1, 1], [], []>} : vector<8x8xbf16>, vector<8x8xbf16>, vector<8x8xf32> -> vector<8x8xf32>
    %102 = vector.extract_strided_slice %35 {offsets = [0, 24], sizes = [8, 8], strides = [1, 1]} : vector<8x32xbf16> to vector<8x8xbf16>
    %103 = vector.extract_strided_slice %37 {offsets = [0, 24], sizes = [8, 8], strides = [1, 1]} : vector<8x32xbf16> to vector<8x8xbf16>
    %104 = vector.extract_strided_slice %39 {offsets = [0, 24], sizes = [8, 8], strides = [1, 1]} : vector<8x32xbf16> to vector<8x8xbf16>
    %cst_37 = arith.constant dense<0.000000e+00> : vector<8x8xf32>
    %105 = tpu.matmul %102, %103, %cst_37 {dimension_numbers = #tpu.dot_dimension_numbers<[1], [1], [0], [0], [0, 0, 1, 0], [], []>} : vector<8x8xbf16>, vector<8x8xbf16>, vector<8x8xf32> -> vector<8x8xf32>
    %cst_38 = arith.constant 0.000000e+00 : f32
    %106 = vector.broadcast %cst_38 : f32 to vector<8x8xf32>
    %107 = arith.cmpf ogt, %41, %106 : vector<8x8xf32>
    %cst_39 = arith.constant -1.000000e+09 : f32
    %108 = vector.broadcast %cst_39 : f32 to vector<8x8xf32>
    %109 = arith.select %107, %105, %108 : vector<8x8xi1>, vector<8x8xf32>
    %cst_40 = arith.constant dense<0xFF800000> : vector<8xf32>
    %110 = vector.multi_reduction <maximumf>, %109, %cst_40 [1] : vector<8x8xf32> to vector<8xf32>
    %111 = vector.shape_cast %110 : vector<8xf32> to vector<8x1xf32>
    %112 = vector.broadcast %111 : vector<8x1xf32> to vector<8x8xf32>
    %113 = arith.subf %109, %112 : vector<8x8xf32>
    %114 = math.exp %113 : vector<8x8xf32>
    %cst_41 = arith.constant dense<0.000000e+00> : vector<8xf32>
    %115 = vector.multi_reduction <add>, %114, %cst_41 [1] : vector<8x8xf32> to vector<8xf32>
    %116 = vector.shape_cast %115 : vector<8xf32> to vector<8x1xf32>
    %117 = tpu.reciprocal %116 {approx = true} : vector<8x1xf32> -> vector<8x1xf32>
    %118 = vector.broadcast %117 : vector<8x1xf32> to vector<8x8xf32>
    %119 = arith.mulf %114, %118 : vector<8x8xf32>
    %120 = arith.truncf %119 : vector<8x8xf32> to vector<8x8xbf16>
    %cst_42 = arith.constant dense<0.000000e+00> : vector<8x8xf32>
    %121 = tpu.matmul %120, %104, %cst_42 {dimension_numbers = #tpu.dot_dimension_numbers<[1], [0], [0], [1], [0, 0, 1, 1], [], []>} : vector<8x8xbf16>, vector<8x8xbf16>, vector<8x8xf32> -> vector<8x8xf32>
    %122 = tpu.concatenate %61, %81, %101, %121 in 1 : vector<8x8xf32>, vector<8x8xf32>, vector<8x8xf32>, vector<8x8xf32> -> vector<8x32xf32>
    %123 = arith.truncf %122 : vector<8x32xf32> to vector<8x32xbf16>
    %c0_43 = arith.constant 0 : index
    %c0_44 = arith.constant 0 : index
    %124 = vector.load %arg7[%c0_43, %c0_44] : memref<32x32xbf16, #tpu.memory_space<vmem>>, vector<32x32xbf16>
    %cst_45 = arith.constant dense<0.000000e+00> : vector<8x32xf32>
    %125 = tpu.matmul %123, %124, %cst_45 {dimension_numbers = #tpu.dot_dimension_numbers<[1], [0], [0], [1], [0, 0, 1, 1], [], []>} : vector<8x32xbf16>, vector<32x32xbf16>, vector<8x32xf32> -> vector<8x32xf32>
    %c0_46 = arith.constant 0 : index
    %c0_47 = arith.constant 0 : index
    %126 = vector.load %arg8[%c0_46, %c0_47] : memref<1x32xf32, #tpu.memory_space<vmem>>, vector<1x32xf32>
    %127 = vector.broadcast %126 : vector<1x32xf32> to vector<8x32xf32>
    %128 = arith.addf %125, %127 : vector<8x32xf32>
    %129 = arith.addf %1, %128 : vector<8x32xf32>
    %c0_48 = arith.constant 0 : index
    %c0_49 = arith.constant 0 : index
    %c0_50 = arith.constant 0 : index
    %130 = vector.load %arg9[%c0_48, %c0_49, %c0_50] : memref<1x8x32xf32, #tpu.memory_space<vmem>>, vector<1x8x32xf32>
    %131 = vector.shape_cast %130 : vector<1x8x32xf32> to vector<8x32xf32>
    %132 = vector.shape_cast %129 : vector<8x32xf32> to vector<1x8x32xf32>
    tpu.vector_store %arg9[%c0_48, %c0_49, %c0_50], %132 {strides = array<i32>} : memref<1x8x32xf32, #tpu.memory_space<vmem>>, vector<1x8x32xf32>,
    return
  }
  func.func @transform_0(%arg0: i32) -> (i32, i32, i32) {
    %c0_i32 = arith.constant 0 : i32
    %c0_i32_0 = arith.constant 0 : i32
    %c0_i32_1 = arith.constant 0 : i32
    return %arg0, %c0_i32, %c0_i32_0 : i32, i32, i32
  }
  func.func @transform_1(%arg0: i32) -> (i32, i32, i32) {
    %c0_i32 = arith.constant 0 : i32
    %c0_i32_0 = arith.constant 0 : i32
    %c0_i32_1 = arith.constant 0 : i32
    return %arg0, %c0_i32, %c0_i32_0 : i32, i32, i32
  }
  func.func @transform_2(%arg0: i32) -> (i32, i32) {
    %c0_i32 = arith.constant 0 : i32
    %c0_i32_0 = arith.constant 0 : i32
    %c0_i32_1 = arith.constant 0 : i32
    return %c0_i32, %c0_i32_0 : i32, i32
  }
  func.func @transform_3(%arg0: i32) -> (i32, i32) {
    %c0_i32 = arith.constant 0 : i32
    %c0_i32_0 = arith.constant 0 : i32
    %c0_i32_1 = arith.constant 0 : i32
    return %c0_i32, %c0_i32_0 : i32, i32
  }
  func.func @transform_4(%arg0: i32) -> (i32, i32) {
    %c0_i32 = arith.constant 0 : i32
    %c0_i32_0 = arith.constant 0 : i32
    %c0_i32_1 = arith.constant 0 : i32
    return %c0_i32, %c0_i32_0 : i32, i32
  }
  func.func @transform_5(%arg0: i32) -> (i32, i32) {
    %c0_i32 = arith.constant 0 : i32
    %c0_i32_0 = arith.constant 0 : i32
    %c0_i32_1 = arith.constant 0 : i32
    return %c0_i32, %c0_i32_0 : i32, i32
  }
  func.func @transform_6(%arg0: i32) -> (i32, i32) {
    %c0_i32 = arith.constant 0 : i32
    %c0_i32_0 = arith.constant 0 : i32
    %c0_i32_1 = arith.constant 0 : i32
    return %c0_i32, %c0_i32_0 : i32, i32
  }
  func.func @transform_7(%arg0: i32) -> (i32, i32) {
    %c0_i32 = arith.constant 0 : i32
    %c0_i32_0 = arith.constant 0 : i32
    %c0_i32_1 = arith.constant 0 : i32
    return %c0_i32, %c0_i32_0 : i32, i32
  }
  func.func @transform_8(%arg0: i32) -> (i32, i32, i32) {
    %c0_i32 = arith.constant 0 : i32
    %c0_i32_0 = arith.constant 0 : i32
    %c0_i32_1 = arith.constant 0 : i32
    return %arg0, %c0_i32, %c0_i32_0 : i32, i32, i32
  }
}

module attributes {stable_mosaic.version = 11 : i64} {
  func.func @_ffn_sublayer_kernel(%arg0: i32, %arg1: memref<16x32xf32, #tpu.memory_space<vmem>>, %arg2: memref<1x32xf32, #tpu.memory_space<vmem>>, %arg3: memref<1x32xf32, #tpu.memory_space<vmem>>, %arg4: memref<32x64xbf16, #tpu.memory_space<vmem>>, %arg5: memref<1x64xf32, #tpu.memory_space<vmem>>, %arg6: memref<64x32xbf16, #tpu.memory_space<vmem>>, %arg7: memref<1x32xf32, #tpu.memory_space<vmem>>, %arg8: memref<16x32xf32, #tpu.memory_space<vmem>>) attributes {dimension_semantics = [#tpu.dimension_semantics<parallel>], iteration_bounds = array<i64: 1>, scalar_prefetch = 0 : i64, scratch_operands = 0 : i64, tpu.core_type = #tpu.core_type<tc>, window_params = [{transform_indices = @transform_0, window_bounds = array<i64: 16, 32>}, {pipeline_mode = #tpu.pipeline_mode<synchronous>, transform_indices = @transform_1, window_bounds = array<i64: 1, 32>}, {pipeline_mode = #tpu.pipeline_mode<synchronous>, transform_indices = @transform_2, window_bounds = array<i64: 1, 32>}, {pipeline_mode = #tpu.pipeline_mode<synchronous>, transform_indices = @transform_3, window_bounds = array<i64: 32, 64>}, {pipeline_mode = #tpu.pipeline_mode<synchronous>, transform_indices = @transform_4, window_bounds = array<i64: 1, 64>}, {pipeline_mode = #tpu.pipeline_mode<synchronous>, transform_indices = @transform_5, window_bounds = array<i64: 64, 32>}, {pipeline_mode = #tpu.pipeline_mode<synchronous>, transform_indices = @transform_6, window_bounds = array<i64: 1, 32>}, {transform_indices = @transform_7, window_bounds = array<i64: 16, 32>}]} {
    %c0 = arith.constant 0 : index
    %c0_0 = arith.constant 0 : index
    %0 = vector.load %arg1[%c0, %c0_0] : memref<16x32xf32, #tpu.memory_space<vmem>>, vector<16x32xf32>
    %c0_1 = arith.constant 0 : index
    %c0_2 = arith.constant 0 : index
    %1 = vector.load %arg2[%c0_1, %c0_2] : memref<1x32xf32, #tpu.memory_space<vmem>>, vector<1x32xf32>
    %c0_3 = arith.constant 0 : index
    %c0_4 = arith.constant 0 : index
    %2 = vector.load %arg3[%c0_3, %c0_4] : memref<1x32xf32, #tpu.memory_space<vmem>>, vector<1x32xf32>
    %cst = arith.constant dense<0.000000e+00> : vector<16xf32>
    %3 = vector.multi_reduction <add>, %0, %cst [1] : vector<16x32xf32> to vector<16xf32>
    %4 = vector.shape_cast %3 : vector<16xf32> to vector<16x1xf32>
    %cst_5 = arith.constant 3.200000e+01 : f32
    %5 = vector.broadcast %cst_5 : f32 to vector<16x1xf32>
    %6 = arith.divf %4, %5 : vector<16x1xf32>
    %7 = vector.broadcast %6 : vector<16x1xf32> to vector<16x32xf32>
    %8 = arith.subf %0, %7 : vector<16x32xf32>
    %9 = arith.mulf %8, %8 : vector<16x32xf32>
    %cst_6 = arith.constant dense<0.000000e+00> : vector<16xf32>
    %10 = vector.multi_reduction <add>, %9, %cst_6 [1] : vector<16x32xf32> to vector<16xf32>
    %11 = vector.shape_cast %10 : vector<16xf32> to vector<16x1xf32>
    %cst_7 = arith.constant 3.200000e+01 : f32
    %12 = vector.broadcast %cst_7 : f32 to vector<16x1xf32>
    %13 = arith.divf %11, %12 : vector<16x1xf32>
    %14 = vector.broadcast %6 : vector<16x1xf32> to vector<16x32xf32>
    %15 = arith.subf %0, %14 : vector<16x32xf32>
    %16 = vector.broadcast %1 : vector<1x32xf32> to vector<16x32xf32>
    %17 = arith.mulf %16, %15 : vector<16x32xf32>
    %cst_8 = arith.constant 9.99999997E-7 : f32
    %18 = vector.broadcast %cst_8 : f32 to vector<16x1xf32>
    %19 = arith.addf %13, %18 : vector<16x1xf32>
    %20 = math.rsqrt %19 : vector<16x1xf32>
    %21 = vector.broadcast %20 : vector<16x1xf32> to vector<16x32xf32>
    %22 = arith.mulf %17, %21 : vector<16x32xf32>
    %23 = vector.broadcast %2 : vector<1x32xf32> to vector<16x32xf32>
    %24 = arith.addf %22, %23 : vector<16x32xf32>
    %25 = arith.truncf %24 : vector<16x32xf32> to vector<16x32xbf16>
    %c0_9 = arith.constant 0 : index
    %c0_10 = arith.constant 0 : index
    %26 = vector.load %arg4[%c0_9, %c0_10] : memref<32x64xbf16, #tpu.memory_space<vmem>>, vector<32x64xbf16>
    %cst_11 = arith.constant dense<0.000000e+00> : vector<16x64xf32>
    %27 = tpu.matmul %25, %26, %cst_11 {dimension_numbers = #tpu.dot_dimension_numbers<[1], [0], [0], [1], [0, 0, 1, 1], [], []>} : vector<16x32xbf16>, vector<32x64xbf16>, vector<16x64xf32> -> vector<16x64xf32>
    %c0_12 = arith.constant 0 : index
    %c0_13 = arith.constant 0 : index
    %28 = vector.load %arg5[%c0_12, %c0_13] : memref<1x64xf32, #tpu.memory_space<vmem>>, vector<1x64xf32>
    %29 = vector.broadcast %28 : vector<1x64xf32> to vector<16x64xf32>
    %30 = arith.addf %27, %29 : vector<16x64xf32>
    %cst_14 = arith.constant 0.000000e+00 : f32
    %31 = vector.broadcast %cst_14 : f32 to vector<16x64xf32>
    %32 = arith.maximumf %30, %31 : vector<16x64xf32>
    %33 = arith.truncf %32 : vector<16x64xf32> to vector<16x64xbf16>
    %c0_15 = arith.constant 0 : index
    %c0_16 = arith.constant 0 : index
    %34 = vector.load %arg6[%c0_15, %c0_16] : memref<64x32xbf16, #tpu.memory_space<vmem>>, vector<64x32xbf16>
    %cst_17 = arith.constant dense<0.000000e+00> : vector<16x32xf32>
    %35 = tpu.matmul %33, %34, %cst_17 {dimension_numbers = #tpu.dot_dimension_numbers<[1], [0], [0], [1], [0, 0, 1, 1], [], []>} : vector<16x64xbf16>, vector<64x32xbf16>, vector<16x32xf32> -> vector<16x32xf32>
    %c0_18 = arith.constant 0 : index
    %c0_19 = arith.constant 0 : index
    %36 = vector.load %arg7[%c0_18, %c0_19] : memref<1x32xf32, #tpu.memory_space<vmem>>, vector<1x32xf32>
    %37 = vector.broadcast %36 : vector<1x32xf32> to vector<16x32xf32>
    %38 = arith.addf %35, %37 : vector<16x32xf32>
    %39 = arith.addf %0, %38 : vector<16x32xf32>
    %c0_20 = arith.constant 0 : index
    %c0_21 = arith.constant 0 : index
    %40 = vector.load %arg8[%c0_20, %c0_21] : memref<16x32xf32, #tpu.memory_space<vmem>>, vector<16x32xf32>
    tpu.vector_store %arg8[%c0_20, %c0_21], %39 {strides = array<i32>} : memref<16x32xf32, #tpu.memory_space<vmem>>, vector<16x32xf32>,
    return
  }
  func.func @transform_0(%arg0: i32) -> (i32, i32) {
    %c0_i32 = arith.constant 0 : i32
    %c0_i32_0 = arith.constant 0 : i32
    return %arg0, %c0_i32 : i32, i32
  }
  func.func @transform_1(%arg0: i32) -> (i32, i32) {
    %c0_i32 = arith.constant 0 : i32
    %c0_i32_0 = arith.constant 0 : i32
    %c0_i32_1 = arith.constant 0 : i32
    return %c0_i32, %c0_i32_0 : i32, i32
  }
  func.func @transform_2(%arg0: i32) -> (i32, i32) {
    %c0_i32 = arith.constant 0 : i32
    %c0_i32_0 = arith.constant 0 : i32
    %c0_i32_1 = arith.constant 0 : i32
    return %c0_i32, %c0_i32_0 : i32, i32
  }
  func.func @transform_3(%arg0: i32) -> (i32, i32) {
    %c0_i32 = arith.constant 0 : i32
    %c0_i32_0 = arith.constant 0 : i32
    %c0_i32_1 = arith.constant 0 : i32
    return %c0_i32, %c0_i32_0 : i32, i32
  }
  func.func @transform_4(%arg0: i32) -> (i32, i32) {
    %c0_i32 = arith.constant 0 : i32
    %c0_i32_0 = arith.constant 0 : i32
    %c0_i32_1 = arith.constant 0 : i32
    return %c0_i32, %c0_i32_0 : i32, i32
  }
  func.func @transform_5(%arg0: i32) -> (i32, i32) {
    %c0_i32 = arith.constant 0 : i32
    %c0_i32_0 = arith.constant 0 : i32
    %c0_i32_1 = arith.constant 0 : i32
    return %c0_i32, %c0_i32_0 : i32, i32
  }
  func.func @transform_6(%arg0: i32) -> (i32, i32) {
    %c0_i32 = arith.constant 0 : i32
    %c0_i32_0 = arith.constant 0 : i32
    %c0_i32_1 = arith.constant 0 : i32
    return %c0_i32, %c0_i32_0 : i32, i32
  }
  func.func @transform_7(%arg0: i32) -> (i32, i32) {
    %c0_i32 = arith.constant 0 : i32
    %c0_i32_0 = arith.constant 0 : i32
    return %arg0, %c0_i32 : i32, i32
  }
}

module attributes {stable_mosaic.version = 11 : i64} {
  func.func @_layernorm_kernel(%arg0: i32, %arg1: memref<16x32xf32, #tpu.memory_space<vmem>>, %arg2: memref<1x32xf32, #tpu.memory_space<vmem>>, %arg3: memref<1x32xf32, #tpu.memory_space<vmem>>, %arg4: memref<16x32xf32, #tpu.memory_space<vmem>>) attributes {dimension_semantics = [#tpu.dimension_semantics<parallel>], iteration_bounds = array<i64: 1>, scalar_prefetch = 0 : i64, scratch_operands = 0 : i64, tpu.core_type = #tpu.core_type<tc>, window_params = [{transform_indices = @transform_0, window_bounds = array<i64: 16, 32>}, {pipeline_mode = #tpu.pipeline_mode<synchronous>, transform_indices = @transform_1, window_bounds = array<i64: 1, 32>}, {pipeline_mode = #tpu.pipeline_mode<synchronous>, transform_indices = @transform_2, window_bounds = array<i64: 1, 32>}, {transform_indices = @transform_3, window_bounds = array<i64: 16, 32>}]} {
    %c0 = arith.constant 0 : index
    %c0_0 = arith.constant 0 : index
    %0 = vector.load %arg1[%c0, %c0_0] : memref<16x32xf32, #tpu.memory_space<vmem>>, vector<16x32xf32>
    %c0_1 = arith.constant 0 : index
    %c0_2 = arith.constant 0 : index
    %1 = vector.load %arg2[%c0_1, %c0_2] : memref<1x32xf32, #tpu.memory_space<vmem>>, vector<1x32xf32>
    %c0_3 = arith.constant 0 : index
    %c0_4 = arith.constant 0 : index
    %2 = vector.load %arg3[%c0_3, %c0_4] : memref<1x32xf32, #tpu.memory_space<vmem>>, vector<1x32xf32>
    %cst = arith.constant dense<0.000000e+00> : vector<16xf32>
    %3 = vector.multi_reduction <add>, %0, %cst [1] : vector<16x32xf32> to vector<16xf32>
    %4 = vector.shape_cast %3 : vector<16xf32> to vector<16x1xf32>
    %cst_5 = arith.constant 3.200000e+01 : f32
    %5 = vector.broadcast %cst_5 : f32 to vector<16x1xf32>
    %6 = arith.divf %4, %5 : vector<16x1xf32>
    %7 = vector.broadcast %6 : vector<16x1xf32> to vector<16x32xf32>
    %8 = arith.subf %0, %7 : vector<16x32xf32>
    %9 = arith.mulf %8, %8 : vector<16x32xf32>
    %cst_6 = arith.constant dense<0.000000e+00> : vector<16xf32>
    %10 = vector.multi_reduction <add>, %9, %cst_6 [1] : vector<16x32xf32> to vector<16xf32>
    %11 = vector.shape_cast %10 : vector<16xf32> to vector<16x1xf32>
    %cst_7 = arith.constant 3.200000e+01 : f32
    %12 = vector.broadcast %cst_7 : f32 to vector<16x1xf32>
    %13 = arith.divf %11, %12 : vector<16x1xf32>
    %14 = vector.broadcast %6 : vector<16x1xf32> to vector<16x32xf32>
    %15 = arith.subf %0, %14 : vector<16x32xf32>
    %16 = vector.broadcast %1 : vector<1x32xf32> to vector<16x32xf32>
    %17 = arith.mulf %16, %15 : vector<16x32xf32>
    %cst_8 = arith.constant 9.99999997E-7 : f32
    %18 = vector.broadcast %cst_8 : f32 to vector<16x1xf32>
    %19 = arith.addf %13, %18 : vector<16x1xf32>
    %20 = math.rsqrt %19 : vector<16x1xf32>
    %21 = vector.broadcast %20 : vector<16x1xf32> to vector<16x32xf32>
    %22 = arith.mulf %17, %21 : vector<16x32xf32>
    %23 = vector.broadcast %2 : vector<1x32xf32> to vector<16x32xf32>
    %24 = arith.addf %22, %23 : vector<16x32xf32>
    %c0_9 = arith.constant 0 : index
    %c0_10 = arith.constant 0 : index
    %25 = vector.load %arg4[%c0_9, %c0_10] : memref<16x32xf32, #tpu.memory_space<vmem>>, vector<16x32xf32>
    tpu.vector_store %arg4[%c0_9, %c0_10], %24 {strides = array<i32>} : memref<16x32xf32, #tpu.memory_space<vmem>>, vector<16x32xf32>,
    return
  }
  func.func @transform_0(%arg0: i32) -> (i32, i32) {
    %c0_i32 = arith.constant 0 : i32
    %c0_i32_0 = arith.constant 0 : i32
    return %arg0, %c0_i32 : i32, i32
  }
  func.func @transform_1(%arg0: i32) -> (i32, i32) {
    %c0_i32 = arith.constant 0 : i32
    %c0_i32_0 = arith.constant 0 : i32
    %c0_i32_1 = arith.constant 0 : i32
    return %c0_i32, %c0_i32_0 : i32, i32
  }
  func.func @transform_2(%arg0: i32) -> (i32, i32) {
    %c0_i32 = arith.constant 0 : i32
    %c0_i32_0 = arith.constant 0 : i32
    %c0_i32_1 = arith.constant 0 : i32
    return %c0_i32, %c0_i32_0 : i32, i32
  }
  func.func @transform_3(%arg0: i32) -> (i32, i32) {
    %c0_i32 = arith.constant 0 : i32
    %c0_i32_0 = arith.constant 0 : i32
    return %arg0, %c0_i32 : i32, i32
  }
}

module attributes {stable_mosaic.version = 11 : i64} {
  func.func @_cross_attn_kernel(%arg0: i32, %arg1: memref<1x8x32xf32, #tpu.memory_space<vmem>>, %arg2: memref<1x8x32xf32, #tpu.memory_space<vmem>>, %arg3: memref<1x8x8xf32, #tpu.memory_space<vmem>>, %arg4: memref<1x32xf32, #tpu.memory_space<vmem>>, %arg5: memref<1x32xf32, #tpu.memory_space<vmem>>, %arg6: memref<32x32xbf16, #tpu.memory_space<vmem>>, %arg7: memref<1x32xf32, #tpu.memory_space<vmem>>, %arg8: memref<32x64xbf16, #tpu.memory_space<vmem>>, %arg9: memref<1x64xf32, #tpu.memory_space<vmem>>, %arg10: memref<32x32xbf16, #tpu.memory_space<vmem>>, %arg11: memref<1x32xf32, #tpu.memory_space<vmem>>, %arg12: memref<1x8x32xf32, #tpu.memory_space<vmem>>) attributes {dimension_semantics = [#tpu.dimension_semantics<parallel>], iteration_bounds = array<i64: 2>, scalar_prefetch = 0 : i64, scratch_operands = 0 : i64, tpu.core_type = #tpu.core_type<tc>, window_params = [{transform_indices = @transform_0, window_bounds = array<i64: 1, 8, 32>}, {transform_indices = @transform_1, window_bounds = array<i64: 1, 8, 32>}, {transform_indices = @transform_2, window_bounds = array<i64: 1, 8, 8>}, {pipeline_mode = #tpu.pipeline_mode<synchronous>, transform_indices = @transform_3, window_bounds = array<i64: 1, 32>}, {pipeline_mode = #tpu.pipeline_mode<synchronous>, transform_indices = @transform_4, window_bounds = array<i64: 1, 32>}, {pipeline_mode = #tpu.pipeline_mode<synchronous>, transform_indices = @transform_5, window_bounds = array<i64: 32, 32>}, {pipeline_mode = #tpu.pipeline_mode<synchronous>, transform_indices = @transform_6, window_bounds = array<i64: 1, 32>}, {pipeline_mode = #tpu.pipeline_mode<synchronous>, transform_indices = @transform_7, window_bounds = array<i64: 32, 64>}, {pipeline_mode = #tpu.pipeline_mode<synchronous>, transform_indices = @transform_8, window_bounds = array<i64: 1, 64>}, {pipeline_mode = #tpu.pipeline_mode<synchronous>, transform_indices = @transform_9, window_bounds = array<i64: 32, 32>}, {pipeline_mode = #tpu.pipeline_mode<synchronous>, transform_indices = @transform_10, window_bounds = array<i64: 1, 32>}, {transform_indices = @transform_11, window_bounds = array<i64: 1, 8, 32>}]} {
    %c0 = arith.constant 0 : index
    %c0_0 = arith.constant 0 : index
    %c0_1 = arith.constant 0 : index
    %0 = vector.load %arg1[%c0, %c0_0, %c0_1] : memref<1x8x32xf32, #tpu.memory_space<vmem>>, vector<1x8x32xf32>
    %1 = vector.shape_cast %0 : vector<1x8x32xf32> to vector<8x32xf32>
    %c0_2 = arith.constant 0 : index
    %c0_3 = arith.constant 0 : index
    %c0_4 = arith.constant 0 : index
    %2 = vector.load %arg2[%c0_2, %c0_3, %c0_4] : memref<1x8x32xf32, #tpu.memory_space<vmem>>, vector<1x8x32xf32>
    %3 = vector.shape_cast %2 : vector<1x8x32xf32> to vector<8x32xf32>
    %c0_5 = arith.constant 0 : index
    %c0_6 = arith.constant 0 : index
    %4 = vector.load %arg4[%c0_5, %c0_6] : memref<1x32xf32, #tpu.memory_space<vmem>>, vector<1x32xf32>
    %c0_7 = arith.constant 0 : index
    %c0_8 = arith.constant 0 : index
    %5 = vector.load %arg5[%c0_7, %c0_8] : memref<1x32xf32, #tpu.memory_space<vmem>>, vector<1x32xf32>
    %cst = arith.constant dense<0.000000e+00> : vector<8xf32>
    %6 = vector.multi_reduction <add>, %1, %cst [1] : vector<8x32xf32> to vector<8xf32>
    %7 = vector.shape_cast %6 : vector<8xf32> to vector<8x1xf32>
    %cst_9 = arith.constant 3.200000e+01 : f32
    %8 = vector.broadcast %cst_9 : f32 to vector<8x1xf32>
    %9 = arith.divf %7, %8 : vector<8x1xf32>
    %10 = vector.broadcast %9 : vector<8x1xf32> to vector<8x32xf32>
    %11 = arith.subf %1, %10 : vector<8x32xf32>
    %12 = arith.mulf %11, %11 : vector<8x32xf32>
    %cst_10 = arith.constant dense<0.000000e+00> : vector<8xf32>
    %13 = vector.multi_reduction <add>, %12, %cst_10 [1] : vector<8x32xf32> to vector<8xf32>
    %14 = vector.shape_cast %13 : vector<8xf32> to vector<8x1xf32>
    %cst_11 = arith.constant 3.200000e+01 : f32
    %15 = vector.broadcast %cst_11 : f32 to vector<8x1xf32>
    %16 = arith.divf %14, %15 : vector<8x1xf32>
    %17 = vector.broadcast %9 : vector<8x1xf32> to vector<8x32xf32>
    %18 = arith.subf %1, %17 : vector<8x32xf32>
    %19 = vector.broadcast %4 : vector<1x32xf32> to vector<8x32xf32>
    %20 = arith.mulf %19, %18 : vector<8x32xf32>
    %cst_12 = arith.constant 9.99999997E-7 : f32
    %21 = vector.broadcast %cst_12 : f32 to vector<8x1xf32>
    %22 = arith.addf %16, %21 : vector<8x1xf32>
    %23 = math.rsqrt %22 : vector<8x1xf32>
    %24 = vector.broadcast %23 : vector<8x1xf32> to vector<8x32xf32>
    %25 = arith.mulf %20, %24 : vector<8x32xf32>
    %26 = vector.broadcast %5 : vector<1x32xf32> to vector<8x32xf32>
    %27 = arith.addf %25, %26 : vector<8x32xf32>
    %28 = arith.truncf %27 : vector<8x32xf32> to vector<8x32xbf16>
    %c0_13 = arith.constant 0 : index
    %c0_14 = arith.constant 0 : index
    %29 = vector.load %arg6[%c0_13, %c0_14] : memref<32x32xbf16, #tpu.memory_space<vmem>>, vector<32x32xbf16>
    %cst_15 = arith.constant dense<0.000000e+00> : vector<8x32xf32>
    %30 = tpu.matmul %28, %29, %cst_15 {dimension_numbers = #tpu.dot_dimension_numbers<[1], [0], [0], [1], [0, 0, 1, 1], [], []>} : vector<8x32xbf16>, vector<32x32xbf16>, vector<8x32xf32> -> vector<8x32xf32>
    %c0_16 = arith.constant 0 : index
    %c0_17 = arith.constant 0 : index
    %31 = vector.load %arg7[%c0_16, %c0_17] : memref<1x32xf32, #tpu.memory_space<vmem>>, vector<1x32xf32>
    %32 = vector.broadcast %31 : vector<1x32xf32> to vector<8x32xf32>
    %33 = arith.addf %30, %32 : vector<8x32xf32>
    %34 = arith.truncf %3 : vector<8x32xf32> to vector<8x32xbf16>
    %c0_18 = arith.constant 0 : index
    %c0_19 = arith.constant 0 : index
    %35 = vector.load %arg8[%c0_18, %c0_19] : memref<32x64xbf16, #tpu.memory_space<vmem>>, vector<32x64xbf16>
    %cst_20 = arith.constant dense<0.000000e+00> : vector<8x64xf32>
    %36 = tpu.matmul %34, %35, %cst_20 {dimension_numbers = #tpu.dot_dimension_numbers<[1], [0], [0], [1], [0, 0, 1, 1], [], []>} : vector<8x32xbf16>, vector<32x64xbf16>, vector<8x64xf32> -> vector<8x64xf32>
    %c0_21 = arith.constant 0 : index
    %c0_22 = arith.constant 0 : index
    %37 = vector.load %arg9[%c0_21, %c0_22] : memref<1x64xf32, #tpu.memory_space<vmem>>, vector<1x64xf32>
    %38 = vector.broadcast %37 : vector<1x64xf32> to vector<8x64xf32>
    %39 = arith.addf %36, %38 : vector<8x64xf32>
    %cst_23 = arith.constant 0.353553385 : f32
    %40 = vector.broadcast %cst_23 : f32 to vector<8x32xf32>
    %41 = arith.mulf %33, %40 : vector<8x32xf32>
    %42 = arith.truncf %41 : vector<8x32xf32> to vector<8x32xbf16>
    %43 = vector.extract_strided_slice %39 {offsets = [0, 0], sizes = [8, 32], strides = [1, 1]} : vector<8x64xf32> to vector<8x32xf32>
    %44 = arith.truncf %43 : vector<8x32xf32> to vector<8x32xbf16>
    %45 = vector.extract_strided_slice %39 {offsets = [0, 32], sizes = [8, 32], strides = [1, 1]} : vector<8x64xf32> to vector<8x32xf32>
    %46 = arith.truncf %45 : vector<8x32xf32> to vector<8x32xbf16>
    %c0_24 = arith.constant 0 : index
    %c0_25 = arith.constant 0 : index
    %c0_26 = arith.constant 0 : index
    %47 = vector.load %arg3[%c0_24, %c0_25, %c0_26] : memref<1x8x8xf32, #tpu.memory_space<vmem>>, vector<1x8x8xf32>
    %48 = vector.shape_cast %47 : vector<1x8x8xf32> to vector<8x8xf32>
    %49 = vector.extract_strided_slice %42 {offsets = [0, 0], sizes = [8, 8], strides = [1, 1]} : vector<8x32xbf16> to vector<8x8xbf16>
    %50 = vector.extract_strided_slice %44 {offsets = [0, 0], sizes = [8, 8], strides = [1, 1]} : vector<8x32xbf16> to vector<8x8xbf16>
    %51 = vector.extract_strided_slice %46 {offsets = [0, 0], sizes = [8, 8], strides = [1, 1]} : vector<8x32xbf16> to vector<8x8xbf16>
    %cst_27 = arith.constant dense<0.000000e+00> : vector<8x8xf32>
    %52 = tpu.matmul %49, %50, %cst_27 {dimension_numbers = #tpu.dot_dimension_numbers<[1], [1], [0], [0], [0, 0, 1, 0], [], []>} : vector<8x8xbf16>, vector<8x8xbf16>, vector<8x8xf32> -> vector<8x8xf32>
    %cst_28 = arith.constant 0.000000e+00 : f32
    %53 = vector.broadcast %cst_28 : f32 to vector<8x8xf32>
    %54 = arith.cmpf ogt, %48, %53 : vector<8x8xf32>
    %cst_29 = arith.constant -1.000000e+09 : f32
    %55 = vector.broadcast %cst_29 : f32 to vector<8x8xf32>
    %56 = arith.select %54, %52, %55 : vector<8x8xi1>, vector<8x8xf32>
    %cst_30 = arith.constant dense<0xFF800000> : vector<8xf32>
    %57 = vector.multi_reduction <maximumf>, %56, %cst_30 [1] : vector<8x8xf32> to vector<8xf32>
    %58 = vector.shape_cast %57 : vector<8xf32> to vector<8x1xf32>
    %59 = vector.broadcast %58 : vector<8x1xf32> to vector<8x8xf32>
    %60 = arith.subf %56, %59 : vector<8x8xf32>
    %61 = math.exp %60 : vector<8x8xf32>
    %cst_31 = arith.constant dense<0.000000e+00> : vector<8xf32>
    %62 = vector.multi_reduction <add>, %61, %cst_31 [1] : vector<8x8xf32> to vector<8xf32>
    %63 = vector.shape_cast %62 : vector<8xf32> to vector<8x1xf32>
    %64 = tpu.reciprocal %63 {approx = true} : vector<8x1xf32> -> vector<8x1xf32>
    %65 = vector.broadcast %64 : vector<8x1xf32> to vector<8x8xf32>
    %66 = arith.mulf %61, %65 : vector<8x8xf32>
    %67 = arith.truncf %66 : vector<8x8xf32> to vector<8x8xbf16>
    %cst_32 = arith.constant dense<0.000000e+00> : vector<8x8xf32>
    %68 = tpu.matmul %67, %51, %cst_32 {dimension_numbers = #tpu.dot_dimension_numbers<[1], [0], [0], [1], [0, 0, 1, 1], [], []>} : vector<8x8xbf16>, vector<8x8xbf16>, vector<8x8xf32> -> vector<8x8xf32>
    %69 = vector.extract_strided_slice %42 {offsets = [0, 8], sizes = [8, 8], strides = [1, 1]} : vector<8x32xbf16> to vector<8x8xbf16>
    %70 = vector.extract_strided_slice %44 {offsets = [0, 8], sizes = [8, 8], strides = [1, 1]} : vector<8x32xbf16> to vector<8x8xbf16>
    %71 = vector.extract_strided_slice %46 {offsets = [0, 8], sizes = [8, 8], strides = [1, 1]} : vector<8x32xbf16> to vector<8x8xbf16>
    %cst_33 = arith.constant dense<0.000000e+00> : vector<8x8xf32>
    %72 = tpu.matmul %69, %70, %cst_33 {dimension_numbers = #tpu.dot_dimension_numbers<[1], [1], [0], [0], [0, 0, 1, 0], [], []>} : vector<8x8xbf16>, vector<8x8xbf16>, vector<8x8xf32> -> vector<8x8xf32>
    %cst_34 = arith.constant 0.000000e+00 : f32
    %73 = vector.broadcast %cst_34 : f32 to vector<8x8xf32>
    %74 = arith.cmpf ogt, %48, %73 : vector<8x8xf32>
    %cst_35 = arith.constant -1.000000e+09 : f32
    %75 = vector.broadcast %cst_35 : f32 to vector<8x8xf32>
    %76 = arith.select %74, %72, %75 : vector<8x8xi1>, vector<8x8xf32>
    %cst_36 = arith.constant dense<0xFF800000> : vector<8xf32>
    %77 = vector.multi_reduction <maximumf>, %76, %cst_36 [1] : vector<8x8xf32> to vector<8xf32>
    %78 = vector.shape_cast %77 : vector<8xf32> to vector<8x1xf32>
    %79 = vector.broadcast %78 : vector<8x1xf32> to vector<8x8xf32>
    %80 = arith.subf %76, %79 : vector<8x8xf32>
    %81 = math.exp %80 : vector<8x8xf32>
    %cst_37 = arith.constant dense<0.000000e+00> : vector<8xf32>
    %82 = vector.multi_reduction <add>, %81, %cst_37 [1] : vector<8x8xf32> to vector<8xf32>
    %83 = vector.shape_cast %82 : vector<8xf32> to vector<8x1xf32>
    %84 = tpu.reciprocal %83 {approx = true} : vector<8x1xf32> -> vector<8x1xf32>
    %85 = vector.broadcast %84 : vector<8x1xf32> to vector<8x8xf32>
    %86 = arith.mulf %81, %85 : vector<8x8xf32>
    %87 = arith.truncf %86 : vector<8x8xf32> to vector<8x8xbf16>
    %cst_38 = arith.constant dense<0.000000e+00> : vector<8x8xf32>
    %88 = tpu.matmul %87, %71, %cst_38 {dimension_numbers = #tpu.dot_dimension_numbers<[1], [0], [0], [1], [0, 0, 1, 1], [], []>} : vector<8x8xbf16>, vector<8x8xbf16>, vector<8x8xf32> -> vector<8x8xf32>
    %89 = vector.extract_strided_slice %42 {offsets = [0, 16], sizes = [8, 8], strides = [1, 1]} : vector<8x32xbf16> to vector<8x8xbf16>
    %90 = vector.extract_strided_slice %44 {offsets = [0, 16], sizes = [8, 8], strides = [1, 1]} : vector<8x32xbf16> to vector<8x8xbf16>
    %91 = vector.extract_strided_slice %46 {offsets = [0, 16], sizes = [8, 8], strides = [1, 1]} : vector<8x32xbf16> to vector<8x8xbf16>
    %cst_39 = arith.constant dense<0.000000e+00> : vector<8x8xf32>
    %92 = tpu.matmul %89, %90, %cst_39 {dimension_numbers = #tpu.dot_dimension_numbers<[1], [1], [0], [0], [0, 0, 1, 0], [], []>} : vector<8x8xbf16>, vector<8x8xbf16>, vector<8x8xf32> -> vector<8x8xf32>
    %cst_40 = arith.constant 0.000000e+00 : f32
    %93 = vector.broadcast %cst_40 : f32 to vector<8x8xf32>
    %94 = arith.cmpf ogt, %48, %93 : vector<8x8xf32>
    %cst_41 = arith.constant -1.000000e+09 : f32
    %95 = vector.broadcast %cst_41 : f32 to vector<8x8xf32>
    %96 = arith.select %94, %92, %95 : vector<8x8xi1>, vector<8x8xf32>
    %cst_42 = arith.constant dense<0xFF800000> : vector<8xf32>
    %97 = vector.multi_reduction <maximumf>, %96, %cst_42 [1] : vector<8x8xf32> to vector<8xf32>
    %98 = vector.shape_cast %97 : vector<8xf32> to vector<8x1xf32>
    %99 = vector.broadcast %98 : vector<8x1xf32> to vector<8x8xf32>
    %100 = arith.subf %96, %99 : vector<8x8xf32>
    %101 = math.exp %100 : vector<8x8xf32>
    %cst_43 = arith.constant dense<0.000000e+00> : vector<8xf32>
    %102 = vector.multi_reduction <add>, %101, %cst_43 [1] : vector<8x8xf32> to vector<8xf32>
    %103 = vector.shape_cast %102 : vector<8xf32> to vector<8x1xf32>
    %104 = tpu.reciprocal %103 {approx = true} : vector<8x1xf32> -> vector<8x1xf32>
    %105 = vector.broadcast %104 : vector<8x1xf32> to vector<8x8xf32>
    %106 = arith.mulf %101, %105 : vector<8x8xf32>
    %107 = arith.truncf %106 : vector<8x8xf32> to vector<8x8xbf16>
    %cst_44 = arith.constant dense<0.000000e+00> : vector<8x8xf32>
    %108 = tpu.matmul %107, %91, %cst_44 {dimension_numbers = #tpu.dot_dimension_numbers<[1], [0], [0], [1], [0, 0, 1, 1], [], []>} : vector<8x8xbf16>, vector<8x8xbf16>, vector<8x8xf32> -> vector<8x8xf32>
    %109 = vector.extract_strided_slice %42 {offsets = [0, 24], sizes = [8, 8], strides = [1, 1]} : vector<8x32xbf16> to vector<8x8xbf16>
    %110 = vector.extract_strided_slice %44 {offsets = [0, 24], sizes = [8, 8], strides = [1, 1]} : vector<8x32xbf16> to vector<8x8xbf16>
    %111 = vector.extract_strided_slice %46 {offsets = [0, 24], sizes = [8, 8], strides = [1, 1]} : vector<8x32xbf16> to vector<8x8xbf16>
    %cst_45 = arith.constant dense<0.000000e+00> : vector<8x8xf32>
    %112 = tpu.matmul %109, %110, %cst_45 {dimension_numbers = #tpu.dot_dimension_numbers<[1], [1], [0], [0], [0, 0, 1, 0], [], []>} : vector<8x8xbf16>, vector<8x8xbf16>, vector<8x8xf32> -> vector<8x8xf32>
    %cst_46 = arith.constant 0.000000e+00 : f32
    %113 = vector.broadcast %cst_46 : f32 to vector<8x8xf32>
    %114 = arith.cmpf ogt, %48, %113 : vector<8x8xf32>
    %cst_47 = arith.constant -1.000000e+09 : f32
    %115 = vector.broadcast %cst_47 : f32 to vector<8x8xf32>
    %116 = arith.select %114, %112, %115 : vector<8x8xi1>, vector<8x8xf32>
    %cst_48 = arith.constant dense<0xFF800000> : vector<8xf32>
    %117 = vector.multi_reduction <maximumf>, %116, %cst_48 [1] : vector<8x8xf32> to vector<8xf32>
    %118 = vector.shape_cast %117 : vector<8xf32> to vector<8x1xf32>
    %119 = vector.broadcast %118 : vector<8x1xf32> to vector<8x8xf32>
    %120 = arith.subf %116, %119 : vector<8x8xf32>
    %121 = math.exp %120 : vector<8x8xf32>
    %cst_49 = arith.constant dense<0.000000e+00> : vector<8xf32>
    %122 = vector.multi_reduction <add>, %121, %cst_49 [1] : vector<8x8xf32> to vector<8xf32>
    %123 = vector.shape_cast %122 : vector<8xf32> to vector<8x1xf32>
    %124 = tpu.reciprocal %123 {approx = true} : vector<8x1xf32> -> vector<8x1xf32>
    %125 = vector.broadcast %124 : vector<8x1xf32> to vector<8x8xf32>
    %126 = arith.mulf %121, %125 : vector<8x8xf32>
    %127 = arith.truncf %126 : vector<8x8xf32> to vector<8x8xbf16>
    %cst_50 = arith.constant dense<0.000000e+00> : vector<8x8xf32>
    %128 = tpu.matmul %127, %111, %cst_50 {dimension_numbers = #tpu.dot_dimension_numbers<[1], [0], [0], [1], [0, 0, 1, 1], [], []>} : vector<8x8xbf16>, vector<8x8xbf16>, vector<8x8xf32> -> vector<8x8xf32>
    %129 = tpu.concatenate %68, %88, %108, %128 in 1 : vector<8x8xf32>, vector<8x8xf32>, vector<8x8xf32>, vector<8x8xf32> -> vector<8x32xf32>
    %130 = arith.truncf %129 : vector<8x32xf32> to vector<8x32xbf16>
    %c0_51 = arith.constant 0 : index
    %c0_52 = arith.constant 0 : index
    %131 = vector.load %arg10[%c0_51, %c0_52] : memref<32x32xbf16, #tpu.memory_space<vmem>>, vector<32x32xbf16>
    %cst_53 = arith.constant dense<0.000000e+00> : vector<8x32xf32>
    %132 = tpu.matmul %130, %131, %cst_53 {dimension_numbers = #tpu.dot_dimension_numbers<[1], [0], [0], [1], [0, 0, 1, 1], [], []>} : vector<8x32xbf16>, vector<32x32xbf16>, vector<8x32xf32> -> vector<8x32xf32>
    %c0_54 = arith.constant 0 : index
    %c0_55 = arith.constant 0 : index
    %133 = vector.load %arg11[%c0_54, %c0_55] : memref<1x32xf32, #tpu.memory_space<vmem>>, vector<1x32xf32>
    %134 = vector.broadcast %133 : vector<1x32xf32> to vector<8x32xf32>
    %135 = arith.addf %132, %134 : vector<8x32xf32>
    %136 = arith.addf %1, %135 : vector<8x32xf32>
    %c0_56 = arith.constant 0 : index
    %c0_57 = arith.constant 0 : index
    %c0_58 = arith.constant 0 : index
    %137 = vector.load %arg12[%c0_56, %c0_57, %c0_58] : memref<1x8x32xf32, #tpu.memory_space<vmem>>, vector<1x8x32xf32>
    %138 = vector.shape_cast %137 : vector<1x8x32xf32> to vector<8x32xf32>
    %139 = vector.shape_cast %136 : vector<8x32xf32> to vector<1x8x32xf32>
    tpu.vector_store %arg12[%c0_56, %c0_57, %c0_58], %139 {strides = array<i32>} : memref<1x8x32xf32, #tpu.memory_space<vmem>>, vector<1x8x32xf32>,
    return
  }
  func.func @transform_0(%arg0: i32) -> (i32, i32, i32) {
    %c0_i32 = arith.constant 0 : i32
    %c0_i32_0 = arith.constant 0 : i32
    %c0_i32_1 = arith.constant 0 : i32
    return %arg0, %c0_i32, %c0_i32_0 : i32, i32, i32
  }
  func.func @transform_1(%arg0: i32) -> (i32, i32, i32) {
    %c0_i32 = arith.constant 0 : i32
    %c0_i32_0 = arith.constant 0 : i32
    %c0_i32_1 = arith.constant 0 : i32
    return %arg0, %c0_i32, %c0_i32_0 : i32, i32, i32
  }
  func.func @transform_2(%arg0: i32) -> (i32, i32, i32) {
    %c0_i32 = arith.constant 0 : i32
    %c0_i32_0 = arith.constant 0 : i32
    %c0_i32_1 = arith.constant 0 : i32
    return %arg0, %c0_i32, %c0_i32_0 : i32, i32, i32
  }
  func.func @transform_3(%arg0: i32) -> (i32, i32) {
    %c0_i32 = arith.constant 0 : i32
    %c0_i32_0 = arith.constant 0 : i32
    %c0_i32_1 = arith.constant 0 : i32
    return %c0_i32, %c0_i32_0 : i32, i32
  }
  func.func @transform_4(%arg0: i32) -> (i32, i32) {
    %c0_i32 = arith.constant 0 : i32
    %c0_i32_0 = arith.constant 0 : i32
    %c0_i32_1 = arith.constant 0 : i32
    return %c0_i32, %c0_i32_0 : i32, i32
  }
  func.func @transform_5(%arg0: i32) -> (i32, i32) {
    %c0_i32 = arith.constant 0 : i32
    %c0_i32_0 = arith.constant 0 : i32
    %c0_i32_1 = arith.constant 0 : i32
    return %c0_i32, %c0_i32_0 : i32, i32
  }
  func.func @transform_6(%arg0: i32) -> (i32, i32) {
    %c0_i32 = arith.constant 0 : i32
    %c0_i32_0 = arith.constant 0 : i32
    %c0_i32_1 = arith.constant 0 : i32
    return %c0_i32, %c0_i32_0 : i32, i32
  }
  func.func @transform_7(%arg0: i32) -> (i32, i32) {
    %c0_i32 = arith.constant 0 : i32
    %c0_i32_0 = arith.constant 0 : i32
    %c0_i32_1 = arith.constant 0 : i32
    return %c0_i32, %c0_i32_0 : i32, i32
  }
  func.func @transform_8(%arg0: i32) -> (i32, i32) {
    %c0_i32 = arith.constant 0 : i32
    %c0_i32_0 = arith.constant 0 : i32
    %c0_i32_1 = arith.constant 0 : i32
    return %c0_i32, %c0_i32_0 : i32, i32
  }
  func.func @transform_9(%arg0: i32) -> (i32, i32) {
    %c0_i32 = arith.constant 0 : i32
    %c0_i32_0 = arith.constant 0 : i32
    %c0_i32_1 = arith.constant 0 : i32
    return %c0_i32, %c0_i32_0 : i32, i32
  }
  func.func @transform_10(%arg0: i32) -> (i32, i32) {
    %c0_i32 = arith.constant 0 : i32
    %c0_i32_0 = arith.constant 0 : i32
    %c0_i32_1 = arith.constant 0 : i32
    return %c0_i32, %c0_i32_0 : i32, i32
  }
  func.func @transform_11(%arg0: i32) -> (i32, i32, i32) {
    %c0_i32 = arith.constant 0 : i32
    %c0_i32_0 = arith.constant 0 : i32
    %c0_i32_1 = arith.constant 0 : i32
    return %arg0, %c0_i32, %c0_i32_0 : i32, i32, i32
  }
}

module attributes {stable_mosaic.version = 11 : i64} {
  func.func @_layernorm_kernel(%arg0: i32, %arg1: memref<16x32xf32, #tpu.memory_space<vmem>>, %arg2: memref<1x32xf32, #tpu.memory_space<vmem>>, %arg3: memref<1x32xf32, #tpu.memory_space<vmem>>, %arg4: memref<16x32xf32, #tpu.memory_space<vmem>>) attributes {dimension_semantics = [#tpu.dimension_semantics<parallel>], iteration_bounds = array<i64: 1>, scalar_prefetch = 0 : i64, scratch_operands = 0 : i64, tpu.core_type = #tpu.core_type<tc>, window_params = [{transform_indices = @transform_0, window_bounds = array<i64: 16, 32>}, {pipeline_mode = #tpu.pipeline_mode<synchronous>, transform_indices = @transform_1, window_bounds = array<i64: 1, 32>}, {pipeline_mode = #tpu.pipeline_mode<synchronous>, transform_indices = @transform_2, window_bounds = array<i64: 1, 32>}, {transform_indices = @transform_3, window_bounds = array<i64: 16, 32>}]} {
    %c0 = arith.constant 0 : index
    %c0_0 = arith.constant 0 : index
    %0 = vector.load %arg1[%c0, %c0_0] : memref<16x32xf32, #tpu.memory_space<vmem>>, vector<16x32xf32>
    %c0_1 = arith.constant 0 : index
    %c0_2 = arith.constant 0 : index
    %1 = vector.load %arg2[%c0_1, %c0_2] : memref<1x32xf32, #tpu.memory_space<vmem>>, vector<1x32xf32>
    %c0_3 = arith.constant 0 : index
    %c0_4 = arith.constant 0 : index
    %2 = vector.load %arg3[%c0_3, %c0_4] : memref<1x32xf32, #tpu.memory_space<vmem>>, vector<1x32xf32>
    %cst = arith.constant dense<0.000000e+00> : vector<16xf32>
    %3 = vector.multi_reduction <add>, %0, %cst [1] : vector<16x32xf32> to vector<16xf32>
    %4 = vector.shape_cast %3 : vector<16xf32> to vector<16x1xf32>
    %cst_5 = arith.constant 3.200000e+01 : f32
    %5 = vector.broadcast %cst_5 : f32 to vector<16x1xf32>
    %6 = arith.divf %4, %5 : vector<16x1xf32>
    %7 = vector.broadcast %6 : vector<16x1xf32> to vector<16x32xf32>
    %8 = arith.subf %0, %7 : vector<16x32xf32>
    %9 = arith.mulf %8, %8 : vector<16x32xf32>
    %cst_6 = arith.constant dense<0.000000e+00> : vector<16xf32>
    %10 = vector.multi_reduction <add>, %9, %cst_6 [1] : vector<16x32xf32> to vector<16xf32>
    %11 = vector.shape_cast %10 : vector<16xf32> to vector<16x1xf32>
    %cst_7 = arith.constant 3.200000e+01 : f32
    %12 = vector.broadcast %cst_7 : f32 to vector<16x1xf32>
    %13 = arith.divf %11, %12 : vector<16x1xf32>
    %14 = vector.broadcast %6 : vector<16x1xf32> to vector<16x32xf32>
    %15 = arith.subf %0, %14 : vector<16x32xf32>
    %16 = vector.broadcast %1 : vector<1x32xf32> to vector<16x32xf32>
    %17 = arith.mulf %16, %15 : vector<16x32xf32>
    %cst_8 = arith.constant 9.99999997E-7 : f32
    %18 = vector.broadcast %cst_8 : f32 to vector<16x1xf32>
    %19 = arith.addf %13, %18 : vector<16x1xf32>
    %20 = math.rsqrt %19 : vector<16x1xf32>
    %21 = vector.broadcast %20 : vector<16x1xf32> to vector<16x32xf32>
    %22 = arith.mulf %17, %21 : vector<16x32xf32>
    %23 = vector.broadcast %2 : vector<1x32xf32> to vector<16x32xf32>
    %24 = arith.addf %22, %23 : vector<16x32xf32>
    %c0_9 = arith.constant 0 : index
    %c0_10 = arith.constant 0 : index
    %25 = vector.load %arg4[%c0_9, %c0_10] : memref<16x32xf32, #tpu.memory_space<vmem>>, vector<16x32xf32>
    tpu.vector_store %arg4[%c0_9, %c0_10], %24 {strides = array<i32>} : memref<16x32xf32, #tpu.memory_space<vmem>>, vector<16x32xf32>,
    return
  }
  func.func @transform_0(%arg0: i32) -> (i32, i32) {
    %c0_i32 = arith.constant 0 : i32
    %c0_i32_0 = arith.constant 0 : i32
    return %arg0, %c0_i32 : i32, i32
  }
  func.func @transform_1(%arg0: i32) -> (i32, i32) {
    %c0_i32 = arith.constant 0 : i32
    %c0_i32_0 = arith.constant 0 : i32
    %c0_i32_1 = arith.constant 0 : i32
    return %c0_i32, %c0_i32_0 : i32, i32
  }
  func.func @transform_2(%arg0: i32) -> (i32, i32) {
    %c0_i32 = arith.constant 0 : i32
    %c0_i32_0 = arith.constant 0 : i32
    %c0_i32_1 = arith.constant 0 : i32
    return %c0_i32, %c0_i32_0 : i32, i32
  }
  func.func @transform_3(%arg0: i32) -> (i32, i32) {
    %c0_i32 = arith.constant 0 : i32
    %c0_i32_0 = arith.constant 0 : i32
    return %arg0, %c0_i32 : i32, i32
  }
}

</mosaic_0001>

<bundles_post_ra>
// kernel: _lambda_.16
= control target key start
LH: loop header
LB: loop body
LE: loop exit
PB: predicated region body
PF: predicated region fallthrough
CT: control target
= control target key end

     0   :  { %vm18_vm0 = vcmask 261120   ;;  %s118_s0 = inlined_call_operand.vmem [shape: f32[16,32], index: 0, kind: input, shape index: {}]   ;;  %s119_s1 = inlined_call_operand.vmem [shape: f32[1,32], index: 1, kind: input, shape index: {}]   ;;  %s120_s2 = inlined_call_operand.vmem [shape: f32[1,32], index: 2, kind: input, shape index: {}]   ;;  %s121_s3 = inlined_call_operand.vmem [shape: f32[16,32], index: 3, kind: output, shape index: {}]  }
   0x1   :  { %v14_v0 = vld [vmem:[%s118_s0] sm:$0xff]  ;;  %v15_v1 = vld [vmem:[%s118_s0 + $0x8] sm:$0xff] }
   0x2   :  { %v19_v2 = vsel %vm18_vm0, %v14_v0, 0.0  ;;  %v22_v3 = vsel %vm18_vm0, %v15_v1, 0.0  ;;  %v68_v20 = vld [vmem:[%s119_s1] ss:$0 sm:$0xff] }
   0x3   :  { %20 = vadd.xlane.f32.xlu0 %v19_v2  ;;  %v69_v23 = vld [vmem:[%s120_s2] ss:$0 sm:$0xff] }
   0x7   :  { %23 = vadd.xlane.f32.xlu0 %v22_v3 }
  0x90   :  { %v21_v4 = vpop.xlane.xlu0 %20 }
  0x91   :  { %v26_v5 = vmul.f32 0.03125, %v21_v4 }
  0x93   :  { %v28_v6 = vsub.f32 %v14_v0, %v26_v5 }
  0x94   :  { %v24_v7 = vpop.xlane.xlu0 %23 }
  0x95   :  { %v27_v8 = vmul.f32 0.03125, %v24_v7  ;;  %v30_v9 = vmul.f32 %v28_v6, %v28_v6  ;;  %v46_v21 = vmul.f32 %v68_v20, %v28_v6 }
  0x97   :  { %v29_v10 = vsub.f32 %v15_v1, %v27_v8  ;;  %v32_v11 = vsel %vm18_vm0, %v30_v9, 0.0 }
  0x98   :  { %33 = vadd.xlane.f32.xlu1 %v32_v11 }
  0x99   :  { %v31_v12 = vmul.f32 %v29_v10, %v29_v10  ;;  %v47_v25 = vmul.f32 %v68_v20, %v29_v10 }
  0x9b   :  { %v35_v13 = vsel %vm18_vm0, %v31_v12, 0.0 }
  0x9c   :  { %36 = vadd.xlane.f32.xlu1 %v35_v13 }
 0x125   :  { %v34_v14 = vpop.xlane.xlu1 %33 }
 0x126   :  { %v38_v15 = vmul.f32 0.03125, %v34_v14 }
 0x128   :  { %v48_v16 = vadd.f32 1e-06, %v38_v15 }
 0x129   :  { %v37_v17 = vpop.xlane.xlu1 %36 }
 0x12a   :  { %70 = vrsqrt.f32 %v48_v16  ;;  %v39_v18 = vmul.f32 0.03125, %v37_v17 }
 0x12c   :  { %v49_v19 = vadd.f32 1e-06, %v39_v18 }
 0x12e   :  { %72 = vrsqrt.f32 %v49_v19 }
 0x134   :  { %v71_v22 = vpop.eup %70 }
 0x135   :  { %v52_v24 = vmul.f32 %v71_v22, %v46_v21 }
 0x137   :  { %v60_v26 = vadd.f32 %v69_v23, %v52_v24 }
 0x138   :  { %v73_v27 = vpop.eup %72 }
 0x139   :  { %62 = vst.msk [vmem:[%s121_s3] sm:$0xff] %vm18_vm0, %v60_v26  ;;  %v53_v28 = vmul.f32 %v73_v27, %v47_v25 }
 0x13b   :  { %v61_v29 = vadd.f32 %v69_v23, %v53_v28 }
 0x13d   :  { %63 = vst.msk [vmem:[%s121_s3 + $0x8] sm:$0xff] %vm18_vm0, %v61_v29 }

// kernel: _lambda_.13
= control target key start
LH: loop header
LB: loop body
LE: loop exit
PB: predicated region body
PF: predicated region fallthrough
CT: control target
= control target key end

     0   :  { %vm31_vm0 = vcmask 261120   ;;  %v290_v14 = vmov 0.0   ;;  %vm291_vm1 = vmmov 0   ;;  %vm185_vm2 = vcmask 523264   ;;  %s391_s0 = inlined_call_operand.vmem [shape: f32[16,32], index: 0, kind: input, shape index: {}]   ;;  %s392_s3 = inlined_call_operand.vmem [shape: bf16[32,64], index: 3, kind: input, shape index: {}]   ;;  %s393_s5 = inlined_call_operand.vmem [shape: bf16[64,32], index: 5, kind: input, shape index: {}]   ;;  %s394_s1 = inlined_call_operand.vmem [shape: f32[1,32], index: 1, kind: input, shape index: {}]   ;;  %s395_s2 = inlined_call_operand.vmem [shape: f32[1,32], index: 2, kind: input, shape index: {}]   ;;  %s396_s4 = inlined_call_operand.vmem [shape: f32[1,64], index: 4, kind: input, shape index: {}]   ;;  %s397_s6 = inlined_call_operand.vmem [shape: f32[1,32], index: 6, kind: input, shape index: {}]   ;;  %s398_s7 = inlined_call_operand.vmem [shape: f32[16,32], index: 7, kind: output, shape index: {}]  }
   0x1   :  { %v335_v0 = vld [vmem:[%s391_s0] sm:$0xff]  ;;  %v340_v1 = vld [vmem:[%s391_s0 + $0x8] sm:$0xff]  ;;  %258 = vmatprep.subr.bf16.mxu0 %v290_v14  ;;  %262 = vmatprep.mubr.msk.bf16.mxu0 %vm291_vm1, %v290_v14  ;;  %v284_v36 = vld [vmem:[%s393_s5 + $0x10] sm:$0xff]  }
   0x2   :  { %v32_v2 = vsel %vm31_vm0, %v335_v0, 0.0  ;;  %v35_v3 = vsel %vm31_vm0, %v340_v1, 0.0  ;;  %v280_v15 = vld [vmem:[%s392_s3] sm:$0xff]   ;;  %266 = vmatprep.subr.bf16.mxu1 %v290_v14  ;;  %274 = vmatprep.mubr.msk.bf16.mxu1 %vm291_vm1, %v290_v14  ;;  %v281_v16 = vld [vmem:[%s392_s3 + $0x8] sm:$0xff]   ;;  %v285_v37 = vld [vmem:[%s393_s5 + $0x18] sm:$0xff]  }
   0x3   :  { %33 = vadd.xlane.f32.xlu0 %v32_v2  ;;  %259 = vmatpush3.bf16.msra.mxu0 %v280_v15  ;;  %v282_v17 = vld [vmem:[%s393_s5] sm:$0xff]   ;;  %v283_v18 = vld [vmem:[%s393_s5 + $0x8] sm:$0xff]  }
   0x4   :  { %260 = vmatprep.subr.bf16.mxu0 %v290_v14  ;;  %267 = vmatpush3.bf16.msra.mxu1 %v282_v17  ;;  %v238_v25 = vld [vmem:[%s394_s1] ss:$0 sm:$0xff] }
   0x5   :  { %268 = vmatprep.subr.bf16.mxu1 %v290_v14  ;;  %v239_v31 = vld [vmem:[%s395_s2] ss:$0 sm:$0xff] }
   0x6   :  { %v240_v38 = vld [vmem:[%s396_s4] ss:$0 sm:$0xff] }
   0x7   :  { %36 = vadd.xlane.f32.xlu0 %v35_v3  ;;  %261 = vmatpush3.bf16.msra.mxu0 %v281_v16  ;;  %v244_v48 = vld [vmem:[%s397_s6] ss:$0 sm:$0xff] }
   0x8   :  { %269 = vmatpush3.bf16.msra.mxu1 %v283_v18 }
   0x9   :  { %270 = vmatprep.subr.bf16.mxu1 %v290_v14 }
   0xc   :  { %271 = vmatpush3.bf16.msra.mxu1 %v284_v36 }
   0xd   :  { %272 = vmatprep.subr.bf16.mxu1 %v290_v14 }
  0x10   :  { %273 = vmatpush3.bf16.msra.mxu1 %v285_v37 }
  0x90   :  { %v34_v4 = vpop.xlane.xlu0 %33 }
  0x91   :  { %v39_v5 = vmul.f32 0.03125, %v34_v4 }
  0x93   :  { %v41_v6 = vsub.f32 %v335_v0, %v39_v5 }
  0x94   :  { %v37_v7 = vpop.xlane.xlu0 %36 }
  0x95   :  { %v40_v8 = vmul.f32 0.03125, %v37_v7  ;;  %v43_v9 = vmul.f32 %v41_v6, %v41_v6  ;;  %v59_v27 = vmul.f32 %v238_v25, %v41_v6 }
  0x97   :  { %v42_v10 = vsub.f32 %v340_v1, %v40_v8  ;;  %v45_v11 = vsel %vm31_vm0, %v43_v9, 0.0 }
  0x98   :  { %46 = vadd.xlane.f32.xlu1 %v45_v11 }
  0x99   :  { %v44_v12 = vmul.f32 %v42_v10, %v42_v10  ;;  %v60_v28 = vmul.f32 %v238_v25, %v42_v10 }
  0x9b   :  { %v48_v13 = vsel %vm31_vm0, %v44_v12, 0.0 }
  0x9c   :  { %49 = vadd.xlane.f32.xlu1 %v48_v13 }
 0x125   :  { %v47_v19 = vpop.xlane.xlu1 %46 }
 0x126   :  { %v51_v20 = vmul.f32 0.03125, %v47_v19 }
 0x128   :  { %v61_v21 = vadd.f32 1e-06, %v51_v20 }
 0x129   :  { %v50_v22 = vpop.xlane.xlu1 %49 }
 0x12a   :  { %286 = vrsqrt.f32 %v61_v21  ;;  %v52_v23 = vmul.f32 0.03125, %v50_v22 }
 0x12c   :  { %v62_v24 = vadd.f32 1e-06, %v52_v23 }
 0x12e   :  { %288 = vrsqrt.f32 %v62_v24 }
 0x134   :  { %v287_v26 = vpop.eup %286 }
 0x135   :  { %v65_v29 = vmul.f32 %v287_v26, %v59_v27 }
 0x137   :  { %v73_v33 = vadd.f32 %v239_v31, %v65_v29 }
 0x138   :  { %v289_v30 = vpop.eup %288 }
 0x139   :  { %v66_v32 = vmul.f32 %v289_v30, %v60_v28 }
 0x13b   :  { %v74_v34 = vadd.f32 %v239_v31, %v66_v32 }
 0x13d   :  { %v75_v35 = vpack.c.bf16 %v74_v34, %v73_v33 }
 0x13f   :  { %263 = vmatmul.mubr.msk.bf16.vlgmr.msra.gmra.mrb[0].mxu0 %vm31_vm0, %v75_v35 }
 0x212   :  { %v136_v39 = vpop.f32.mrb[0].mxu0 }
 0x213   :  { %v137_v40 = vadd.f32 %v240_v38, %v136_v39  ;;  %v264_v41 = vpop.f32.mrb[1].mxu0 }
 0x214   :  { %v139_v42 = vpop.f32.mrb[2].mxu0 }
 0x215   :  { %v140_v43 = vadd.f32 %v240_v38, %v139_v42  ;;  %v265_v44 = vpop.f32.mrb[3].mxu0  ;;  %v143_v45 = vmax.f32 %v137_v40, 0.0 }
 0x217   :  { %v144_v46 = vmax.f32 %v140_v43, 0.0 }
 0x219   :  { %v145_v47 = vpack.c.bf16 %v144_v46, %v143_v45 }
 0x21b   :  { %275 = vmatmul.mubr.msk.bf16.vlgmr.msra.gmra.mrb[0].mxu1 %vm185_vm2, %v145_v47 }
 0x2ee   :  { %v223_v49 = vpop.f32.mrb[0].mxu1 }
 0x2ef   :  { %v224_v50 = vadd.f32 %v244_v48, %v223_v49  ;;  %v276_v51 = vpop.f32.mrb[1].mxu1 }
 0x2f0   :  { %v226_v52 = vpop.f32.mrb[2].mxu1 }
 0x2f1   :  { %v230_v53 = vadd.f32 %v224_v50, %v335_v0  ;;  %v227_v54 = vadd.f32 %v244_v48, %v226_v52  ;;  %v277_v55 = vpop.f32.mrb[3].mxu1 }
 0x2f3   :  { %232 = vst.msk [vmem:[%s398_s7] sm:$0xff] %vm31_vm0, %v230_v53  ;;  %v231_v56 = vadd.f32 %v227_v54, %v340_v1 }
 0x2f5   :  { %233 = vst.msk [vmem:[%s398_s7 + $0x8] sm:$0xff] %vm31_vm0, %v231_v56 }

// kernel: _lambda_.12
= control target key start
LH: loop header
LB: loop body
LE: loop exit
PB: predicated region body
PF: predicated region fallthrough
CT: control target
= control target key end

     0   :  { %s1249_s27 = smov 0   ;;  %s1379_s0 = inlined_call_operand.vmem [shape: f32[2,8,32], index: 0, kind: input, shape index: {}]   ;;  %s1380_s1 = inlined_call_operand.vmem [shape: f32[2,8,8], index: 1, kind: input, shape index: {}]   ;;  %s1381_s2 = inlined_call_operand.vmem [shape: f32[1,32], index: 2, kind: input, shape index: {}]   ;;  %s1382_s3 = inlined_call_operand.vmem [shape: f32[1,32], index: 3, kind: input, shape index: {}]   ;;  %s1383_s4 = inlined_call_operand.vmem [shape: bf16[32,96], index: 4, kind: input, shape index: {}]   ;;  %s1384_s5 = inlined_call_operand.vmem [shape: f32[1,96], index: 5, kind: input, shape index: {}]   ;;  %s1385_s6 = inlined_call_operand.vmem [shape: bf16[32,32], index: 6, kind: input, shape index: {}]   ;;  %s1386_s7 = inlined_call_operand.vmem [shape: f32[1,32], index: 7, kind: input, shape index: {}]   ;;  %s1387_s8 = inlined_call_operand.vmem [shape: f32[2,8,32], index: 8, kind: output, shape index: {}]  }
   0x1 LB: > { %s1020_s28 = sadd.s32 4294967295, %s1186_s27   ;;  %p1024_p0 = scmp.ge.s32.totalorder %s1186_s27, 1  ;;  %s1186_s27 = sphi %s1249_s27, %s18_s27  }
   0x2   : > { %p270_p1 = scmp.lt.s32.totalorder %s1186_s27, 3 }
   0x4   : > { %p271_p2 = pnand %p1024_p0, %p270_p1 }
   0x5   : > { %p306_p3 = scmp.lt.s32.totalorder (!%p271_p2), %s1020_s28, 1  ;;  %vm322_vm0 = vcmask (!%p271_p2), 261120   ;;  %v1158_v7 = vld [vmem:[%s1383_s4] sm:$0xff] (!%p271_p2)   ;;  %v1188_v8 = vmov (!%p271_p2), 0.0   ;;  %vm1189_vm1 = vmmov (!%p271_p2), 0   ;;  %v1159_v9 = vld [vmem:[%s1383_s4 + $0x8] sm:$0xff] (!%p271_p2)  }
   0x6   : > { %274 = sbr.rel (%p271_p2) target bundleno = 1806 (0x70e), region = 52  ;;  %1070 = vmatprep.subr.bf16.mxu0 (!%p271_p2), %v1188_v8  ;;  %1074 = vmatprep.mubr.msk.bf16.mxu0 (!%p271_p2), %vm1189_vm1, %v1188_v8  ;;  %v1028_v13 = vld [vmem:[%s1381_s2] ss:$0 sm:$0xff] (!%p271_p2)  ;;  %s1190_s21 = smov (!%p271_p2), 96   ;;  %vm425_vm2 = vcmask (!%p271_p2), 64512   ;;  %vm491_vm4 = vcmask (!%p271_p2), 1043456  }
   0x7   : > { %1071 = vmatpush3.bf16.msra.mxu0 (!%p271_p2), %v1158_v7  ;;  %1078 = vmatprep.subr.bf16.mxu1 (!%p271_p2), %v1188_v8  ;;  %v1029_v16 = vld [vmem:[%s1382_s3] ss:$0 sm:$0xff] (!%p271_p2)  ;;  %s1191_s22 = smov (!%p271_p2), 120   ;;  %s1192_s23 = smov (!%p271_p2), 88   ;;  %vm882_vm5 = vcmask (!%p271_p2), 130048   ;;  %vm884_vm6 = vcmask (!%p271_p2), 195584  }
   0x8   : > { %1072 = vmatprep.subr.bf16.mxu0 (!%p271_p2), %v1188_v8  ;;  %1080 = vmatprep.mubr.msk.bf16.mxu1 (!%p271_p2), %vm1189_vm1, %v1188_v8  ;;  %v1030_v20 = vld [vmem:[%s1384_s5] ss:$0 sm:$0xff] (!%p271_p2)  ;;  %s1193_s24 = smov (!%p271_p2), 80   ;;  %s1194_s25 = smov (!%p271_p2), 112  }
   0x9   : > { %s1195_s26 = smov (!%p271_p2), 72   ;;  %s1197_s11 = smov (!%p271_p2), 64  }
   0xa   : > { %s1198_s12 = smov (!%p271_p2), 56   ;;  %s1199_s13 = smov (!%p271_p2), 48  }
   0xb   : > { %1073 = vmatpush3.bf16.msra.mxu0 (!%p271_p2), %v1159_v9  ;;  %s1200_s14 = smov (!%p271_p2), 40   ;;  %s1201_s15 = smov (!%p271_p2), 8  }
   0xc   : > { %1084 = vmatprep.subr.bf16.mxu0 (!%p271_p2), %v1188_v8  ;;  %s1202_s20 = smov (!%p271_p2), 16  }
   0xd   : > { %s1389_s28 = smov (!%p306_p3, %s1020_s28), 1 }
   0xe   : > { %s1257_s29 = sshll.u32 %s1389_s28, 3  ;;  %s1196_s28 = smov 104  }
   0xf   : > { %s309_s10 = scalar_lea.vmem %s1379_s0, %s1257_s29 }
  0x10   : > { %v1263_v0 = vld [vmem:[%s309_s10] sm:$0xff]  ;;  %s313_s10 = scalar_lea.vmem %s1380_s1, %s1257_s29 }
  0x11   : > { %v323_v1 = vsel %vm322_vm0, %v1263_v0, 0.0  ;;  %v421_v40 = vld [vmem:[%s313_s10] sm:$0xff] }
  0x12   : > { %324 = vadd.xlane.f32.xlu0 %v323_v1  ;;  %vm472_vm3 = vcmp.gt.f32.partialorder %v421_v40, 0.0 }
  0x9f   : > { %v325_v2 = vpop.xlane.xlu0 %324 }
  0xa0   : > { %v327_v3 = vmul.f32 0.03125, %v325_v2 }
  0xa2   : > { %v328_v4 = vsub.f32 %v1263_v0, %v327_v3 }
  0xa4   : > { %v329_v5 = vmul.f32 %v328_v4, %v328_v4  ;;  %v340_v14 = vmul.f32 %v1028_v13, %v328_v4 }
  0xa6   : > { %v330_v6 = vsel %vm322_vm0, %v329_v5, 0.0 }
  0xa7   : > { %331 = vadd.xlane.f32.xlu0 %v330_v6 }
 0x134   : > { %v332_v10 = vpop.xlane.xlu0 %331 }
 0x135   : > { %v333_v11 = vmul.f32 0.03125, %v332_v10 }
 0x137   : > { %v341_v12 = vadd.f32 1e-06, %v333_v11 }
 0x139   : > { %1162 = vrsqrt.f32 %v341_v12 }
 0x143   : > { %v1163_v15 = vpop.eup %1162 }
 0x144   : > { %v343_v17 = vmul.f32 %v1163_v15, %v340_v14 }
 0x146   : > { %v350_v18 = vadd.f32 %v1029_v16, %v343_v17 }
 0x148   : > { %v351_v19 = vpack.c.bf16 %v350_v18, %v350_v18 }
 0x14a   : > { %1075 = vmatmul.mubr.msk.bf16.vlgmr.msra.gmra.mrb[0].mxu0 %vm322_vm0, %v351_v19 }
 0x14b   : > { %1086 = vmatprep.mubr.msk.bf16.mxu0 %vm1189_vm1, %v1188_v8 }
 0x21d   : > { %v412_v21 = vpop.f32.mrb[0].mxu0 }
 0x21e   : > { %v413_v22 = vadd.f32 %v1030_v20, %v412_v21  ;;  %v1076_v23 = vpop.f32.mrb[1].mxu0 }
 0x21f   : > { %v415_v24 = vpop.f32.mrb[2].mxu0 }
 0x220   : > { %v418_v25 = vmul.f32 0.35355338, %v413_v22  ;;  %v1295_v26 = vpack.c.bf16 %v413_v22, %v413_v22  ;;  %v1077_v27 = vpop.f32.mrb[3].mxu0 }
 0x222   : > { %v419_v28 = vpack.c.bf16 %v418_v25, %v418_v25  ;;  %423 = vrot.lane.b32.xlu1 %v1295_v26, %s1190_s21  ;;  %s1203_s21 = smov 24  }
 0x224   : > { %536 = vrot.lane.b32.xlu0 %v419_v28, %s1191_s22 }
 0x226   : > { %538 = vrot.lane.b32.xlu1 %v1295_v26, %s1192_s23 }
 0x22a   : > { %649 = vrot.lane.b32.xlu1 %v1295_v26, %s1193_s24 }
 0x22e   : > { %647 = vrot.lane.b32.xlu1 %v419_v28, %s1194_s25 }
 0x232   : > { %760 = vrot.lane.b32.xlu1 %v1295_v26, %s1195_s26  ;;  %s317_s26 = scalar_lea.vmem %s1387_s8, %s1257_s29 }
 0x236   : > { %758 = vrot.lane.b32.xlu1 %v419_v28, %s1196_s28 }
 0x294   : > { %v424_v29 = vpop.permute.xlu1 %423 }
 0x295   : > { %v430_v30 = vsel %vm425_vm2, %v424_v29, 0 }
 0x296   : > { %1079 = vmatpush3.bf16.xpose.msra.mxu1 %v430_v30  ;;  %v537_v34 = vpop.permute.xlu0 %536 }
 0x297   : > { %1090 = vmatprep.subr.bf16.mxu1 %v1188_v8 }
 0x298   : > { %v539_v31 = vpop.permute.xlu1 %538 }
 0x299   : > { %v544_v32 = vsel %vm425_vm2, %v539_v31, 0 }
 0x29c   : > { %v650_v33 = vpop.permute.xlu1 %649 }
 0x29d   : > { %1081 = vmatmul.mubr.msk.bf16.vlgmr.msra.gmra.mrb[0].mxu1 %vm425_vm2, %v419_v28  ;;  %v655_v36 = vsel %vm425_vm2, %v650_v33, 0 }
 0x29e   : > { %1091 = vmatpush3.bf16.xpose.msra.mxu1 %v544_v32  ;;  %1092 = vmatprep.mubr.msk.bf16.mxu1 %vm1189_vm1, %v1188_v8 }
 0x29f   : > { %1102 = vmatprep.subr.bf16.mxu1 %v1188_v8 }
 0x2a0   : > { %v648_v35 = vpop.permute.xlu1 %647 }
 0x2a4   : > { %v761_v37 = vpop.permute.xlu1 %760 }
 0x2a5   : > { %1093 = vmatmul.mubr.msk.bf16.vlgmr.msra.gmra.mrb[4].mxu1 %vm425_vm2, %v537_v34  ;;  %v766_v38 = vsel %vm425_vm2, %v761_v37, 0 }
 0x2a6   : > { %1103 = vmatpush3.bf16.xpose.msra.mxu1 %v655_v36  ;;  %1104 = vmatprep.mubr.msk.bf16.mxu1 %vm1189_vm1, %v1188_v8 }
 0x2a7   : > { %1114 = vmatprep.subr.bf16.mxu1 %v1188_v8 }
 0x2a8   : > { %v759_v39 = vpop.permute.xlu1 %758 }
 0x2ad   : > { %1105 = vmatmul.mubr.msk.bf16.vlgmr.msra.gmra.mrb[8].mxu1 %vm425_vm2, %v648_v35 }
 0x2ae   : > { %1115 = vmatpush3.bf16.xpose.msra.mxu1 %v766_v38  ;;  %1116 = vmatprep.mubr.msk.bf16.mxu1 %vm1189_vm1, %v1188_v8 }
 0x2af   : > { %1126 = vmatprep.subr.bf16.mxu1 %v1188_v8 }
 0x2b5   : > { %1117 = vmatmul.mubr.msk.bf16.vlgmr.msra.gmra.mrb[12].mxu1 %vm425_vm2, %v759_v39 }
 0x2b6   : > { %1130 = vmatprep.mubr.msk.bf16.mxu1 %vm1189_vm1, %v1188_v8 }
 0x370   : > { %v466_v41 = vpop.f32.mrb[0].mxu1 }
 0x371   : > { %v473_v42 = vsel %vm472_vm3, %v466_v41, -1e+09  ;;  %v1082_v43 = vpop.f32.mrb[1].mxu1 }
 0x372   : > { %v469_v44 = vpop.f32.mrb[2].mxu1  ;;  %v474_v45 = vsel %vm425_vm2, %v473_v42, -inf }
 0x373   : > { %475 = vmax.xlane.f32.xlu1 %v474_v45  ;;  %v1083_v46 = vpop.f32.mrb[3].mxu1 }
 0x378   : > { %v580_v47 = vpop.f32.mrb[4].mxu1 }
 0x379   : > { %v586_v48 = vsel %vm472_vm3, %v580_v47, -1e+09  ;;  %v1094_v49 = vpop.f32.mrb[5].mxu1 }
 0x37a   : > { %v583_v50 = vpop.f32.mrb[6].mxu1  ;;  %v587_v51 = vsel %vm425_vm2, %v586_v48, -inf }
 0x37b   : > { %588 = vmax.xlane.f32.xlu0 %v587_v51  ;;  %v1095_v52 = vpop.f32.mrb[7].mxu1 }
 0x380   : > { %v691_v53 = vpop.f32.mrb[8].mxu1 }
 0x381   : > { %v697_v54 = vsel %vm472_vm3, %v691_v53, -1e+09  ;;  %v1106_v55 = vpop.f32.mrb[9].mxu1 }
 0x382   : > { %v694_v56 = vpop.f32.mrb[10].mxu1  ;;  %v698_v57 = vsel %vm425_vm2, %v697_v54, -inf  ;;  %v1160_v55 = vld [vmem:[%s1385_s6] sm:$0xff]  }
 0x383   : > { %699 = vmax.xlane.f32.xlu1 %v698_v57  ;;  %v1107_v58 = vpop.f32.mrb[11].mxu1  ;;  %1127 = vmatpush3.bf16.msra.mxu1 %v1160_v55  ;;  %v1161_v56 = vld [vmem:[%s1385_s6 + $0x8] sm:$0xff]  }
 0x384   : > { %1128 = vmatprep.subr.bf16.mxu1 %v1188_v8 }
 0x387   : > { %1129 = vmatpush3.bf16.msra.mxu1 %v1161_v56 }
 0x388   : > { %v802_v59 = vpop.f32.mrb[12].mxu1 }
 0x389   : > { %v808_v60 = vsel %vm472_vm3, %v802_v59, -1e+09  ;;  %v1118_v61 = vpop.f32.mrb[13].mxu1 }
 0x38a   : > { %v805_v62 = vpop.f32.mrb[14].mxu1  ;;  %v809_v63 = vsel %vm425_vm2, %v808_v60, -inf }
 0x38b   : > { %810 = vmax.xlane.f32.xlu0 %v809_v63  ;;  %v1119_v1 = vpop.f32.mrb[15].mxu1 }
 0x400   : > { %v476_v2 = vpop.xlane.xlu1 %475 }
 0x401   : > { %v477_v3 = vsub.f32 %v473_v42, %v476_v2 }
 0x403   : > { %v478_v4 = vmul.f32 1.442695, %v477_v3 }
 0x405   : > { %1164 = vpow2.f32 %v478_v4 }
 0x408   : > { %v589_v5 = vpop.xlane.xlu0 %588 }
 0x409   : > { %v590_v6 = vsub.f32 %v586_v48, %v589_v5 }
 0x40b   : > { %v591_v7 = vmul.f32 1.442695, %v590_v6 }
 0x40d   : > { %1166 = vpow2.f32 %v591_v7 }
 0x40f   : > { %v1165_v9 = vpop.eup %1164 }
 0x410   : > { %v480_v10 = vsel %vm425_vm2, %v1165_v9, 0.0  ;;  %v700_v18 = vpop.xlane.xlu1 %699 }
 0x411   : > { %481 = vadd.xlane.f32.xlu1 %v480_v10  ;;  %v701_v19 = vsub.f32 %v697_v54, %v700_v18 }
 0x413   : > { %v702_v20 = vmul.f32 1.442695, %v701_v19 }
 0x417   : > { %v1167_v11 = vpop.eup %1166 }
 0x418   : > { %v811_v12 = vpop.xlane.xlu0 %810  ;;  %v593_v13 = vsel %vm425_vm2, %v1167_v11, 0.0 }
 0x419   : > { %v812_v14 = vsub.f32 %v808_v60, %v811_v12  ;;  %594 = vadd.xlane.f32.xlu0 %v593_v13 }
 0x41b   : > { %v813_v15 = vmul.f32 1.442695, %v812_v14 }
 0x41d   : > { %1168 = vpow2.f32 %v813_v15 }
 0x41e   : > { %1170 = vpow2.f32 %v702_v20 }
 0x422   : > { %486 = vrot.lane.b32.xlu1 %v1295_v26, %s1197_s11 }
 0x427   : > { %v1169_v16 = vpop.eup %1168 }
 0x428   : > { %v815_v17 = vsel %vm425_vm2, %v1169_v16, 0.0  ;;  %v1171_v21 = vpop.eup %1170 }
 0x429   : > { %816 = vadd.xlane.f32.xlu0 %v815_v17  ;;  %v704_v22 = vsel %vm425_vm2, %v1171_v21, 0.0 }
 0x43f   : > { %599 = vrot.lane.b32.xlu0 %v1295_v26, %s1198_s12 }
 0x446   : > { %705 = vadd.xlane.f32.xlu1 %v704_v22 }
 0x457   : > { %710 = vrot.lane.b32.xlu1 %v1295_v26, %s1199_s13 }
 0x45b   : > { %821 = vrot.lane.b32.xlu1 %v1295_v26, %s1200_s14 }
 0x49e   : > { %v482_v23 = vpop.xlane.xlu1 %481 }
 0x49f   : > { %1172 = vrcp.f32 %v482_v23 }
 0x4a2   : > { %v487_v24 = vpop.permute.xlu1 %486 }
 0x4a3   : > { %v493_v25 = vsel %vm491_vm4, %v487_v24, 0 }
 0x4a4   : > { %1085 = vmatpush3.bf16.msra.mxu0 %v493_v25 }
 0x4a5   : > { %1096 = vmatprep.subr.bf16.mxu0 %v1188_v8 }
 0x4a6   : > { %v595_v28 = vpop.xlane.xlu0 %594 }
 0x4a7   : > { %1174 = vrcp.f32 %v595_v28 }
 0x4a9   : > { %v1173_v27 = vpop.eup %1172 }
 0x4aa   : > { %v484_v29 = vmul.f32 %v1173_v27, %v1165_v9  ;;  %v1042_v9 = vld [vmem:[%s1386_s7] ss:$0 sm:$0xff] }
 0x4ac   : > { %v485_v30 = vpack.c.bf16 %v484_v29, %v484_v29 }
 0x4ae   : > { %1087 = vmatmul.mubr.msk.bf16.vlgmr.msra.gmra.mrb[4].mxu0 %vm425_vm2, %v485_v30 }
 0x4af   : > { %1098 = vmatprep.mubr.msk.bf16.mxu0 %vm1189_vm1, %v1188_v8 }
 0x4b1   : > { %v1175_v26 = vpop.eup %1174 }
 0x4b2   : > { %v597_v32 = vmul.f32 %v1175_v26, %v1167_v11 }
 0x4b4   : > { %v598_v35 = vpack.c.bf16 %v597_v32, %v597_v32 }
 0x4b6   : > { %v817_v31 = vpop.xlane.xlu0 %816 }
 0x4ba   : > { %v600_v33 = vpop.permute.xlu0 %599 }
 0x4bb   : > { %v605_v34 = vsel %vm491_vm4, %v600_v33, 0 }
 0x4bc   : > { %1097 = vmatpush3.bf16.msra.mxu0 %v605_v34 }
 0x4bd   : > { %1108 = vmatprep.subr.bf16.mxu0 %v1188_v8 }
 0x4bf   : > { %1099 = vmatmul.mubr.msk.bf16.vlgmr.msra.gmra.mrb[8].mxu0 %vm425_vm2, %v598_v35 }
 0x4c0   : > { %1110 = vmatprep.mubr.msk.bf16.mxu0 %vm1189_vm1, %v1188_v8 }
 0x4d3   : > { %v706_v36 = vpop.xlane.xlu1 %705 }
 0x4d4   : > { %1176 = vrcp.f32 %v706_v36 }
 0x4d5   : > { %1178 = vrcp.f32 %v817_v31 }
 0x4d7   : > { %v711_v37 = vpop.permute.xlu1 %710 }
 0x4d8   : > { %v716_v38 = vsel %vm491_vm4, %v711_v37, 0 }
 0x4d9   : > { %1109 = vmatpush3.bf16.msra.mxu0 %v716_v38 }
 0x4da   : > { %1120 = vmatprep.subr.bf16.mxu0 %v1188_v8 }
 0x4db   : > { %v822_v41 = vpop.permute.xlu1 %821 }
 0x4dc   : > { %v827_v44 = vsel %vm491_vm4, %v822_v41, 0 }
 0x4de   : > { %v1177_v39 = vpop.eup %1176 }
 0x4df   : > { %v708_v40 = vmul.f32 %v1177_v39, %v1171_v21  ;;  %v1179_v43 = vpop.eup %1178 }
 0x4e0   : > { %v819_v45 = vmul.f32 %v1179_v43, %v1169_v16 }
 0x4e1   : > { %v709_v42 = vpack.c.bf16 %v708_v40, %v708_v40 }
 0x4e2   : > { %v820_v46 = vpack.c.bf16 %v819_v45, %v819_v45 }
 0x4e3   : > { %1111 = vmatmul.mubr.msk.bf16.vlgmr.msra.gmra.mrb[12].mxu0 %vm425_vm2, %v709_v42 }
 0x4e4   : > { %1121 = vmatpush3.bf16.msra.mxu0 %v827_v44  ;;  %1122 = vmatprep.mubr.msk.bf16.mxu0 %vm1189_vm1, %v1188_v8 }
 0x4eb   : > { %1123 = vmatmul.mubr.msk.bf16.vlgmr.msra.gmra.mrb[16].mxu0 %vm425_vm2, %v820_v46 }
 0x581   : > { %v529_v47 = vpop.f32.mrb[4].mxu0 }
 0x582   : > { %v1088_v48 = vpop.f32.mrb[5].mxu0 }
 0x583   : > { %v532_v49 = vpop.f32.mrb[6].mxu0 }
 0x584   : > { %v1089_v50 = vpop.f32.mrb[7].mxu0 }
 0x592   : > { %v641_v51 = vpop.f32.mrb[8].mxu0 }
 0x593   : > { %870 = vrot.lane.b32.xlu0 %v641_v51, %s1201_s15  ;;  %v1100_v52 = vpop.f32.mrb[9].mxu0 }
 0x594   : > { %v644_v53 = vpop.f32.mrb[10].mxu0 }
 0x595   : > { %v1101_v54 = vpop.f32.mrb[11].mxu0 }
 0x5b6   : > { %v752_v57 = vpop.f32.mrb[12].mxu0 }
 0x5b7   : > { %874 = vrot.lane.b32.xlu1 %v752_v57, %s1202_s20  ;;  %v1112_v58 = vpop.f32.mrb[13].mxu0 }
 0x5b8   : > { %v755_v59 = vpop.f32.mrb[14].mxu0 }
 0x5b9   : > { %v1113_v60 = vpop.f32.mrb[15].mxu0 }
 0x5be   : > { %v863_v61 = vpop.f32.mrb[16].mxu0 }
 0x5bf   : > { %878 = vrot.lane.b32.xlu0 %v863_v61, %s1203_s21  ;;  %v1124_v62 = vpop.f32.mrb[17].mxu0 }
 0x5c0   : > { %v866_v63 = vpop.f32.mrb[18].mxu0 }
 0x5c1   : > { %v1125_v1 = vpop.f32.mrb[19].mxu0 }
 0x605   : > { %v871_v2 = vpop.permute.xlu0 %870 }
 0x606   : > { %v881_v8 = vsel %vm425_vm2, %v529_v47, %v871_v2 }
 0x629   : > { %v875_v3 = vpop.permute.xlu1 %874 }
 0x62a   : > { %v883_v4 = vsel %vm882_vm5, %v881_v8, %v875_v3 }
 0x631   : > { %v879_v5 = vpop.permute.xlu0 %878 }
 0x632   : > { %v885_v6 = vsel %vm884_vm6, %v883_v4, %v879_v5 }
 0x633   : > { %v886_v7 = vpack.c.bf16 %v885_v6, %v885_v6 }
 0x635   : > { %1131 = vmatmul.mubr.msk.bf16.vlgmr.msra.gmra.mrb[16].mxu1 %vm322_vm0, %v886_v7 }
 0x708   : > { %v947_v10 = vpop.f32.mrb[16].mxu1 }
 0x709   : > { %v948_v11 = vadd.f32 %v1042_v9, %v947_v10  ;;  %v1132_v12 = vpop.f32.mrb[17].mxu1 }
 0x70a   : > { %v950_v13 = vpop.f32.mrb[18].mxu1 }
 0x70b   : > { %v953_v14 = vadd.f32 %v948_v11, %v1263_v0  ;;  %v1133_v15 = vpop.f32.mrb[19].mxu1 }
 0x70d   : > { %954 = vst.msk [vmem:[%s317_s26] sm:$0xff] %vm322_vm0, %v953_v14 }
 0x70e PF: > { %s18_s27 = sadd.s32 1, %s1186_s27  }
 0x70f   : > { %p15_p4 = scmp.ge.s32.totalorder %s18_s27, 4  }
 0x711   :  { %17 = sbr.rel (!%p15_p4) target bundleno = 1 (0x1), region = 85 }

// kernel: _lambda_.18
= control target key start
LH: loop header
LB: loop body
LE: loop exit
PB: predicated region body
PF: predicated region fallthrough
CT: control target
= control target key end

     0   :  { %s1450_s17 = smov 0   ;;  %s1598_s0 = inlined_call_operand.vmem [shape: f32[2,8,32], index: 0, kind: input, shape index: {}]   ;;  %s1599_s1 = inlined_call_operand.vmem [shape: f32[2,8,32], index: 1, kind: input, shape index: {}]   ;;  %s1600_s2 = inlined_call_operand.vmem [shape: f32[2,8,8], index: 2, kind: input, shape index: {}]   ;;  %s1601_s3 = inlined_call_operand.vmem [shape: f32[1,32], index: 3, kind: input, shape index: {}]   ;;  %s1602_s4 = inlined_call_operand.vmem [shape: f32[1,32], index: 4, kind: input, shape index: {}]   ;;  %s1603_s5 = inlined_call_operand.vmem [shape: bf16[32,32], index: 5, kind: input, shape index: {}]   ;;  %s1604_s6 = inlined_call_operand.vmem [shape: f32[1,32], index: 6, kind: input, shape index: {}]   ;;  %s1605_s7 = inlined_call_operand.vmem [shape: bf16[32,64], index: 7, kind: input, shape index: {}]   ;;  %s1606_s8 = inlined_call_operand.vmem [shape: f32[1,64], index: 8, kind: input, shape index: {}]   ;;  %s1607_s9 = inlined_call_operand.vmem [shape: bf16[32,32], index: 9, kind: input, shape index: {}]   ;;  %s1608_s10 = inlined_call_operand.vmem [shape: f32[1,32], index: 10, kind: input, shape index: {}]   ;;  %s1609_s11 = inlined_call_operand.vmem [shape: f32[2,8,32], index: 11, kind: output, shape index: {}]  }
   0x1 LB: > { %s1196_s18 = sadd.s32 4294967295, %s1376_s17   ;;  %p1200_p0 = scmp.ge.s32.totalorder %s1376_s17, 1  ;;  %s1376_s17 = sphi %s1450_s17, %s21_s17  }
   0x2   : > { %p354_p1 = scmp.lt.s32.totalorder %s1376_s17, 3 }
   0x4   : > { %p355_p2 = pnand %p1200_p0, %p354_p1 }
   0x5   : > { %p400_p3 = scmp.lt.s32.totalorder (!%p355_p2), %s1196_s18, 1  ;;  %vm421_vm0 = vcmask (!%p355_p2), 261120   ;;  %v1346_v7 = vld [vmem:[%s1605_s7] sm:$0xff] (!%p355_p2)   ;;  %v1378_v8 = vmov (!%p355_p2), 0.0   ;;  %v1347_v10 = vld [vmem:[%s1605_s7 + $0x8] sm:$0xff] (!%p355_p2)   ;;  %vm1379_vm1 = vmmov (!%p355_p2), 0  }
   0x6   : > { %358 = sbr.rel (%p355_p2) target bundleno = 1793 (0x701), region = 64  ;;  %1262 = vmatprep.subr.bf16.mxu1 (!%p355_p2), %v1378_v8  ;;  %1254 = vmatprep.subr.bf16.mxu0 (!%p355_p2), %v1378_v8  ;;  %v1348_v9 = vld [vmem:[%s1603_s5] sm:$0xff] (!%p355_p2)   ;;  %v1349_v12 = vld [vmem:[%s1603_s5 + $0x8] sm:$0xff] (!%p355_p2)   ;;  %s1380_s23 = smov (!%p355_p2), 120   ;;  %vm588_vm2 = vcmask (!%p355_p2), 64512   ;;  %vm655_vm4 = vcmask (!%p355_p2), 1043456  }
   0x7   : > { %1263 = vmatpush3.bf16.msra.mxu1 (!%p355_p2), %v1346_v7  ;;  %1266 = vmatprep.mubr.msk.bf16.mxu1 (!%p355_p2), %vm1379_vm1, %v1378_v8  ;;  %v1205_v17 = vld [vmem:[%s1601_s3] ss:$0 sm:$0xff] (!%p355_p2)  ;;  %s1381_s24 = smov (!%p355_p2), 112   ;;  %s1383_s12 = smov (!%p355_p2), 88   ;;  %vm1046_vm5 = vcmask (!%p355_p2), 130048   ;;  %vm1048_vm6 = vcmask (!%p355_p2), 195584  }
   0x8   : > { %1264 = vmatprep.subr.bf16.mxu1 (!%p355_p2), %v1378_v8  ;;  %1255 = vmatpush3.bf16.msra.mxu0 (!%p355_p2), %v1348_v9  ;;  %v1206_v20 = vld [vmem:[%s1602_s4] ss:$0 sm:$0xff] (!%p355_p2)  ;;  %s1384_s13 = smov (!%p355_p2), 96   ;;  %s1385_s14 = smov (!%p355_p2), 72  }
   0x9   : > { %1256 = vmatprep.subr.bf16.mxu0 (!%p355_p2), %v1378_v8  ;;  %1258 = vmatprep.mubr.msk.bf16.mxu0 (!%p355_p2), %vm1379_vm1, %v1378_v8  ;;  %v1211_v24 = vld [vmem:[%s1606_s8] ss:$0 sm:$0xff] (!%p355_p2)  ;;  %s1386_s15 = smov (!%p355_p2), 80   ;;  %s1387_s16 = smov (!%p355_p2), 8  }
   0xa   : > { %v1207_v32 = vld [vmem:[%s1604_s6] ss:$0 sm:$0xff] (!%p355_p2) }
   0xb   : > { %1265 = vmatpush3.bf16.msra.mxu1 (!%p355_p2), %v1347_v10 }
   0xc   : > { %1257 = vmatpush3.bf16.msra.mxu0 (!%p355_p2), %v1349_v12  ;;  %1276 = vmatprep.subr.bf16.mxu1 (!%p355_p2), %v1378_v8 }
   0xd   : > { %s1611_s18 = smov (!%p400_p3, %s1196_s18), 1  ;;  %1270 = vmatprep.subr.bf16.mxu0 %v1378_v8 }
   0xe   : > { %s1458_s19 = sshll.u32 %s1611_s18, 3 }
   0xf   : > { %s403_s22 = scalar_lea.vmem %s1598_s0, %s1458_s19  ;;  %s407_s27 = scalar_lea.vmem %s1599_s1, %s1458_s19 }
  0x10   : > { %v1464_v0 = vld [vmem:[%s403_s22] sm:$0xff]  ;;  %s411_s30 = scalar_lea.vmem %s1600_s2, %s1458_s19  ;;  %s415_s29 = scalar_lea.vmem %s1609_s11, %s1458_s19 }
  0x11   : > { %v422_v1 = vsel %vm421_vm0, %v1464_v0, 0.0  ;;  %v418_v11 = vld [vmem:[%s407_s27] sm:$0xff]  ;;  %s1382_s27 = smov 104  }
  0x12   : > { %423 = vadd.xlane.f32.xlu0 %v422_v1  ;;  %v517_v13 = vpack.c.bf16 %v418_v11, %v418_v11  ;;  %v587_v49 = vld [vmem:[%s411_s30] sm:$0xff] }
  0x13   : > { %vm635_vm3 = vcmp.gt.f32.partialorder %v587_v49, 0.0 }
  0x14   : > { %1267 = vmatmul.mubr.msk.bf16.vlgmr.msra.gmra.mrb[0].mxu1 %vm421_vm0, %v517_v13 }
  0x15   : > { %1278 = vmatprep.mubr.msk.bf16.mxu1 %vm1379_vm1, %v1378_v8 }
  0x9f   : > { %v424_v2 = vpop.xlane.xlu0 %423 }
  0xa0   : > { %v426_v3 = vmul.f32 0.03125, %v424_v2 }
  0xa2   : > { %v427_v4 = vsub.f32 %v1464_v0, %v426_v3 }
  0xa4   : > { %v428_v5 = vmul.f32 %v427_v4, %v427_v4  ;;  %v439_v18 = vmul.f32 %v1205_v17, %v427_v4 }
  0xa6   : > { %v429_v6 = vsel %vm421_vm0, %v428_v5, 0.0 }
  0xa7   : > { %430 = vadd.xlane.f32.xlu0 %v429_v6 }
  0xe7   : > { %v578_v25 = vpop.f32.mrb[0].mxu1 }
  0xe8   : > { %v579_v26 = vadd.f32 %v1211_v24, %v578_v25  ;;  %v1268_v27 = vpop.f32.mrb[1].mxu1 }
  0xe9   : > { %v581_v28 = vpop.f32.mrb[2].mxu1 }
  0xea   : > { %v1511_v29 = vpack.c.bf16 %v579_v26, %v579_v26  ;;  %v1269_v30 = vpop.f32.mrb[3].mxu1 }
  0xec   : > { %702 = vrot.lane.b32.xlu1 %v1511_v29, %s1380_s23  ;;  %813 = vrot.lane.b32.xlu0 %v1511_v29, %s1381_s24  ;;  %v593_v31 = vsel %vm588_vm2, %v1511_v29, 0 }
 0x134   : > { %v431_v14 = vpop.xlane.xlu0 %430 }
 0x135   : > { %v432_v15 = vmul.f32 0.03125, %v431_v14 }
 0x137   : > { %v440_v16 = vadd.f32 1e-06, %v432_v15 }
 0x139   : > { %1352 = vrsqrt.f32 %v440_v16 }
 0x143   : > { %v1353_v19 = vpop.eup %1352 }
 0x144   : > { %v442_v21 = vmul.f32 %v1353_v19, %v439_v18 }
 0x146   : > { %v449_v22 = vadd.f32 %v1206_v20, %v442_v21 }
 0x148   : > { %v450_v23 = vpack.c.bf16 %v449_v22, %v449_v22 }
 0x14a   : > { %1259 = vmatmul.mubr.msk.bf16.vlgmr.msra.gmra.mrb[0].mxu0 %vm421_vm0, %v450_v23 }
 0x14b   : > { %1272 = vmatprep.mubr.msk.bf16.mxu0 %vm1379_vm1, %v1378_v8  ;;  %1271 = vmatpush3.bf16.xpose.msra.mxu0 %v593_v31 }
 0x14c   : > { %1282 = vmatprep.subr.bf16.mxu0 %v1378_v8 }
 0x15e   : > { %v703_v37 = vpop.permute.xlu1 %702  ;;  %v814_v42 = vpop.permute.xlu0 %813 }
 0x15f   : > { %v708_v41 = vsel %vm588_vm2, %v703_v37, 0  ;;  %v819_v44 = vsel %vm588_vm2, %v814_v42, 0 }
 0x21d   : > { %v511_v33 = vpop.f32.mrb[0].mxu0 }
 0x21e   : > { %v512_v34 = vadd.f32 %v1207_v32, %v511_v33  ;;  %v1260_v35 = vpop.f32.mrb[1].mxu0 }
 0x21f   : > { %v514_v36 = vpop.f32.mrb[2].mxu0 }
 0x220   : > { %v584_v38 = vmul.f32 0.35355338, %v512_v34  ;;  %v1261_v39 = vpop.f32.mrb[3].mxu0 }
 0x222   : > { %v585_v40 = vpack.c.bf16 %v584_v38, %v584_v38 }
 0x224   : > { %700 = vrot.lane.b32.xlu1 %v585_v40, %s1380_s23  ;;  %1273 = vmatmul.mubr.msk.bf16.vlgmr.msra.gmra.mrb[4].mxu0 %vm588_vm2, %v585_v40  ;;  %s1388_s23 = smov 16  }
 0x225   : > { %1283 = vmatpush3.bf16.xpose.msra.mxu0 %v708_v41  ;;  %1284 = vmatprep.mubr.msk.bf16.mxu0 %vm1379_vm1, %v1378_v8 }
 0x226   : > { %1294 = vmatprep.subr.bf16.mxu0 %v1378_v8 }
 0x228   : > { %811 = vrot.lane.b32.xlu1 %v585_v40, %s1381_s24  ;;  %s1389_s24 = smov 24  }
 0x22c   : > { %924 = vrot.lane.b32.xlu1 %v1511_v29, %s1382_s27 }
 0x230   : > { %922 = vrot.lane.b32.xlu1 %v585_v40, %s1382_s27 }
 0x296   : > { %v701_v43 = vpop.permute.xlu1 %700 }
 0x297   : > { %1285 = vmatmul.mubr.msk.bf16.vlgmr.msra.gmra.mrb[8].mxu0 %vm588_vm2, %v701_v43 }
 0x298   : > { %1295 = vmatpush3.bf16.xpose.msra.mxu0 %v819_v44  ;;  %1296 = vmatprep.mubr.msk.bf16.mxu0 %vm1379_vm1, %v1378_v8 }
 0x299   : > { %1306 = vmatprep.subr.bf16.mxu0 %v1378_v8 }
 0x29a   : > { %v812_v45 = vpop.permute.xlu1 %811 }
 0x29e   : > { %v925_v46 = vpop.permute.xlu1 %924 }
 0x29f   : > { %v930_v47 = vsel %vm588_vm2, %v925_v46, 0  ;;  %1297 = vmatmul.mubr.msk.bf16.vlgmr.msra.gmra.mrb[12].mxu0 %vm588_vm2, %v812_v45 }
 0x2a0   : > { %1307 = vmatpush3.bf16.xpose.msra.mxu0 %v930_v47  ;;  %1308 = vmatprep.mubr.msk.bf16.mxu0 %vm1379_vm1, %v1378_v8 }
 0x2a1   : > { %1318 = vmatprep.subr.bf16.mxu0 %v1378_v8 }
 0x2a2   : > { %v923_v48 = vpop.permute.xlu1 %922 }
 0x2a7   : > { %1309 = vmatmul.mubr.msk.bf16.vlgmr.msra.gmra.mrb[16].mxu0 %vm588_vm2, %v923_v48 }
 0x2a8   : > { %1322 = vmatprep.mubr.msk.bf16.mxu0 %vm1379_vm1, %v1378_v8 }
 0x2f7   : > { %v629_v50 = vpop.f32.mrb[4].mxu0 }
 0x2f8   : > { %v636_v51 = vsel %vm635_vm3, %v629_v50, -1e+09  ;;  %v1274_v52 = vpop.f32.mrb[5].mxu0 }
 0x2f9   : > { %v632_v53 = vpop.f32.mrb[6].mxu0  ;;  %v637_v54 = vsel %vm588_vm2, %v636_v51, -inf }
 0x2fa   : > { %638 = vmax.xlane.f32.xlu1 %v637_v54  ;;  %v1275_v55 = vpop.f32.mrb[7].mxu0 }
 0x36a   : > { %v744_v56 = vpop.f32.mrb[8].mxu0 }
 0x36b   : > { %v750_v57 = vsel %vm635_vm3, %v744_v56, -1e+09  ;;  %v1286_v58 = vpop.f32.mrb[9].mxu0 }
 0x36c   : > { %v747_v59 = vpop.f32.mrb[10].mxu0  ;;  %v751_v60 = vsel %vm588_vm2, %v750_v57, -inf }
 0x36d   : > { %752 = vmax.xlane.f32.xlu0 %v751_v60  ;;  %v1287_v61 = vpop.f32.mrb[11].mxu0 }
 0x372   : > { %v855_v62 = vpop.f32.mrb[12].mxu0 }
 0x373   : > { %v861_v63 = vsel %vm635_vm3, %v855_v62, -1e+09  ;;  %v1298_v1 = vpop.f32.mrb[13].mxu0 }
 0x374   : > { %v858_v2 = vpop.f32.mrb[14].mxu0  ;;  %v862_v3 = vsel %vm588_vm2, %v861_v63, -inf  ;;  %v1350_v1 = vld [vmem:[%s1607_s9] sm:$0xff]  }
 0x375   : > { %863 = vmax.xlane.f32.xlu1 %v862_v3  ;;  %v1299_v4 = vpop.f32.mrb[15].mxu0  ;;  %1319 = vmatpush3.bf16.msra.mxu0 %v1350_v1  ;;  %v1351_v2 = vld [vmem:[%s1607_s9 + $0x8] sm:$0xff]  }
 0x376   : > { %1320 = vmatprep.subr.bf16.mxu0 %v1378_v8 }
 0x379   : > { %1321 = vmatpush3.bf16.msra.mxu0 %v1351_v2 }
 0x37a   : > { %v966_v5 = vpop.f32.mrb[16].mxu0 }
 0x37b   : > { %v972_v6 = vsel %vm635_vm3, %v966_v5, -1e+09  ;;  %v1310_v7 = vpop.f32.mrb[17].mxu0 }
 0x37c   : > { %v969_v9 = vpop.f32.mrb[18].mxu0  ;;  %v973_v10 = vsel %vm588_vm2, %v972_v6, -inf }
 0x37d   : > { %974 = vmax.xlane.f32.xlu1 %v973_v10  ;;  %v1311_v11 = vpop.f32.mrb[19].mxu0 }
 0x387   : > { %v639_v12 = vpop.xlane.xlu1 %638 }
 0x388   : > { %v640_v13 = vsub.f32 %v636_v51, %v639_v12 }
 0x38a   : > { %v641_v14 = vmul.f32 1.442695, %v640_v13 }
 0x38c   : > { %1354 = vpow2.f32 %v641_v14 }
 0x396   : > { %v1355_v15 = vpop.eup %1354 }
 0x397   : > { %v643_v16 = vsel %vm588_vm2, %v1355_v15, 0.0 }
 0x398   : > { %644 = vadd.xlane.f32.xlu0 %v643_v16 }
 0x3fa   : > { %v753_v17 = vpop.xlane.xlu0 %752 }
 0x3fb   : > { %v754_v18 = vsub.f32 %v750_v57, %v753_v17 }
 0x3fd   : > { %v755_v19 = vmul.f32 1.442695, %v754_v18  ;;  %v1223_v18 = vld [vmem:[%s1608_s10] ss:$0 sm:$0xff] }
 0x3ff   : > { %1356 = vpow2.f32 %v755_v19 }
 0x402   : > { %v864_v20 = vpop.xlane.xlu1 %863 }
 0x403   : > { %v865_v21 = vsub.f32 %v861_v63, %v864_v20 }
 0x405   : > { %v866_v22 = vmul.f32 1.442695, %v865_v21 }
 0x407   : > { %1358 = vpow2.f32 %v866_v22 }
 0x409   : > { %v1357_v23 = vpop.eup %1356 }
 0x40a   : > { %v757_v24 = vsel %vm588_vm2, %v1357_v23, 0.0  ;;  %v975_v27 = vpop.xlane.xlu1 %974 }
 0x40b   : > { %758 = vadd.xlane.f32.xlu1 %v757_v24  ;;  %v976_v28 = vsub.f32 %v972_v6, %v975_v27 }
 0x40d   : > { %v977_v30 = vmul.f32 1.442695, %v976_v28 }
 0x40f   : > { %1360 = vpow2.f32 %v977_v30 }
 0x411   : > { %v1359_v25 = vpop.eup %1358 }
 0x412   : > { %v868_v26 = vsel %vm588_vm2, %v1359_v25, 0.0 }
 0x413   : > { %869 = vadd.xlane.f32.xlu0 %v868_v26 }
 0x419   : > { %v1361_v31 = vpop.eup %1360 }
 0x41a   : > { %v979_v32 = vsel %vm588_vm2, %v1361_v31, 0.0 }
 0x41c   : > { %763 = vrot.lane.b32.xlu1 %v1511_v29, %s1383_s12 }
 0x425   : > { %v645_v33 = vpop.xlane.xlu0 %644 }
 0x426   : > { %1362 = vrcp.f32 %v645_v33 }
 0x429   : > { %650 = vrot.lane.b32.xlu0 %v1511_v29, %s1384_s13 }
 0x42d   : > { %985 = vrot.lane.b32.xlu0 %v1511_v29, %s1385_s14 }
 0x430   : > { %v1363_v35 = vpop.eup %1362 }
 0x431   : > { %v647_v37 = vmul.f32 %v1363_v35, %v1355_v15 }
 0x433   : > { %v648_v41 = vpack.c.bf16 %v647_v37, %v647_v37 }
 0x440   : > { %980 = vadd.xlane.f32.xlu1 %v979_v32 }
 0x451   : > { %874 = vrot.lane.b32.xlu1 %v1511_v29, %s1386_s15 }
 0x498   : > { %v759_v34 = vpop.xlane.xlu1 %758 }
 0x499   : > { %1364 = vrcp.f32 %v759_v34 }
 0x49c   : > { %v764_v40 = vpop.permute.xlu1 %763 }
 0x49d   : > { %v769_v43 = vsel %vm655_vm4, %v764_v40, 0 }
 0x4a0   : > { %v870_v36 = vpop.xlane.xlu0 %869 }
 0x4a1   : > { %1366 = vrcp.f32 %v870_v36 }
 0x4a3   : > { %v1365_v42 = vpop.eup %1364 }
 0x4a4   : > { %v651_v38 = vpop.permute.xlu0 %650  ;;  %v761_v29 = vmul.f32 %v1365_v42, %v1357_v23 }
 0x4a5   : > { %v657_v39 = vsel %vm655_vm4, %v651_v38, 0 }
 0x4a6   : > { %1277 = vmatpush3.bf16.msra.mxu1 %v657_v39  ;;  %v762_v44 = vpack.c.bf16 %v761_v29, %v761_v29 }
 0x4a7   : > { %1288 = vmatprep.subr.bf16.mxu1 %v1378_v8 }
 0x4a8   : > { %v986_v50 = vpop.permute.xlu0 %985 }
 0x4a9   : > { %1279 = vmatmul.mubr.msk.bf16.vlgmr.msra.gmra.mrb[4].mxu1 %vm588_vm2, %v648_v41  ;;  %v991_v52 = vsel %vm655_vm4, %v986_v50, 0 }
 0x4aa   : > { %1289 = vmatpush3.bf16.msra.mxu1 %v769_v43  ;;  %1290 = vmatprep.mubr.msk.bf16.mxu1 %vm1379_vm1, %v1378_v8 }
 0x4ab   : > { %1300 = vmatprep.subr.bf16.mxu1 %v1378_v8  ;;  %v1367_v45 = vpop.eup %1366 }
 0x4ac   : > { %v872_v47 = vmul.f32 %v1367_v45, %v1359_v25 }
 0x4ae   : > { %v873_v51 = vpack.c.bf16 %v872_v47, %v872_v47 }
 0x4b1   : > { %1291 = vmatmul.mubr.msk.bf16.vlgmr.msra.gmra.mrb[8].mxu1 %vm588_vm2, %v762_v44 }
 0x4b2   : > { %1302 = vmatprep.mubr.msk.bf16.mxu1 %vm1379_vm1, %v1378_v8 }
 0x4cd   : > { %v981_v46 = vpop.xlane.xlu1 %980 }
 0x4ce   : > { %1368 = vrcp.f32 %v981_v46 }
 0x4d1   : > { %v875_v48 = vpop.permute.xlu1 %874 }
 0x4d2   : > { %v880_v49 = vsel %vm655_vm4, %v875_v48, 0 }
 0x4d3   : > { %1301 = vmatpush3.bf16.msra.mxu1 %v880_v49 }
 0x4d4   : > { %1312 = vmatprep.subr.bf16.mxu1 %v1378_v8 }
 0x4d6   : > { %1303 = vmatmul.mubr.msk.bf16.vlgmr.msra.gmra.mrb[12].mxu1 %vm588_vm2, %v873_v51 }
 0x4d7   : > { %1313 = vmatpush3.bf16.msra.mxu1 %v991_v52  ;;  %1314 = vmatprep.mubr.msk.bf16.mxu1 %vm1379_vm1, %v1378_v8 }
 0x4d8   : > { %v1369_v53 = vpop.eup %1368 }
 0x4d9   : > { %v983_v54 = vmul.f32 %v1369_v53, %v1361_v31 }
 0x4db   : > { %v984_v55 = vpack.c.bf16 %v983_v54, %v983_v54 }
 0x4de   : > { %1315 = vmatmul.mubr.msk.bf16.vlgmr.msra.gmra.mrb[16].mxu1 %vm588_vm2, %v984_v55 }
 0x57c   : > { %v693_v56 = vpop.f32.mrb[4].mxu1 }
 0x57d   : > { %v1280_v57 = vpop.f32.mrb[5].mxu1 }
 0x57e   : > { %v696_v58 = vpop.f32.mrb[6].mxu1 }
 0x57f   : > { %v1281_v59 = vpop.f32.mrb[7].mxu1 }
 0x584   : > { %v805_v60 = vpop.f32.mrb[8].mxu1 }
 0x585   : > { %1034 = vrot.lane.b32.xlu1 %v805_v60, %s1387_s16  ;;  %v1292_v61 = vpop.f32.mrb[9].mxu1 }
 0x586   : > { %v808_v62 = vpop.f32.mrb[10].mxu1 }
 0x587   : > { %v1293_v63 = vpop.f32.mrb[11].mxu1 }
 0x5a9   : > { %v916_v3 = vpop.f32.mrb[12].mxu1 }
 0x5aa   : > { %1038 = vrot.lane.b32.xlu0 %v916_v3, %s1388_s23  ;;  %v1304_v4 = vpop.f32.mrb[13].mxu1 }
 0x5ab   : > { %v919_v5 = vpop.f32.mrb[14].mxu1 }
 0x5ac   : > { %v1305_v6 = vpop.f32.mrb[15].mxu1 }
 0x5b1   : > { %v1027_v7 = vpop.f32.mrb[16].mxu1 }
 0x5b2   : > { %1042 = vrot.lane.b32.xlu1 %v1027_v7, %s1389_s24  ;;  %v1316_v9 = vpop.f32.mrb[17].mxu1 }
 0x5b3   : > { %v1030_v10 = vpop.f32.mrb[18].mxu1 }
 0x5b4   : > { %v1317_v11 = vpop.f32.mrb[19].mxu1 }
 0x5f7   : > { %v1035_v12 = vpop.permute.xlu1 %1034 }
 0x5f8   : > { %v1045_v13 = vsel %vm588_vm2, %v693_v56, %v1035_v12 }
 0x61c   : > { %v1039_v8 = vpop.permute.xlu0 %1038 }
 0x61d   : > { %v1047_v14 = vsel %vm1046_vm5, %v1045_v13, %v1039_v8 }
 0x624   : > { %v1043_v15 = vpop.permute.xlu1 %1042 }
 0x625   : > { %v1049_v16 = vsel %vm1048_vm6, %v1047_v14, %v1043_v15 }
 0x626   : > { %v1050_v17 = vpack.c.bf16 %v1049_v16, %v1049_v16 }
 0x628   : > { %1323 = vmatmul.mubr.msk.bf16.vlgmr.msra.gmra.mrb[20].mxu0 %vm421_vm0, %v1050_v17 }
 0x6fb   : > { %v1111_v19 = vpop.f32.mrb[20].mxu0 }
 0x6fc   : > { %v1112_v20 = vadd.f32 %v1223_v18, %v1111_v19  ;;  %v1324_v21 = vpop.f32.mrb[21].mxu0 }
 0x6fd   : > { %v1114_v22 = vpop.f32.mrb[22].mxu0 }
 0x6fe   : > { %v1117_v23 = vadd.f32 %v1112_v20, %v1464_v0  ;;  %v1325_v24 = vpop.f32.mrb[23].mxu0 }
 0x700   : > { %1118 = vst.msk [vmem:[%s415_s29] sm:$0xff] %vm421_vm0, %v1117_v23 }
 0x701 PF: > { %s21_s17 = sadd.s32 1, %s1376_s17  }
 0x702   : > { %p18_p4 = scmp.ge.s32.totalorder %s21_s17, 4  }
 0x704   :  { %20 = sbr.rel (!%p18_p4) target bundleno = 1 (0x1), region = 100 }

// kernel: _lambda_.23
= control target key start
LH: loop header
LB: loop body
LE: loop exit
PB: predicated region body
PF: predicated region fallthrough
CT: control target
= control target key end

     0   :  { %vm19_vm0 = vcmask 261120   ;;  %s167_s0 = inlined_call_operand.vmem [shape: f32[16,32], index: 0, kind: input, shape index: {}]   ;;  %s168_s1 = inlined_call_operand.vmem [shape: f32[1,32], index: 1, kind: input, shape index: {}]   ;;  %s169_s2 = inlined_call_operand.vmem [shape: f32[1,32], index: 2, kind: input, shape index: {}]   ;;  %s170_s3 = inlined_call_operand.hbm [shape: f32[16,32], index: 3, kind: output, shape index: {}]  }
   0x1   :  { %v15_v0 = vld [vmem:[%s167_s0] sm:$0xff]  ;;  %v16_v1 = vld [vmem:[%s167_s0 + $0x8] sm:$0xff] }
   0x2   :  { %v20_v2 = vsel %vm19_vm0, %v15_v0, 0.0 }
   0x3   :  { %8 = vsyncpa [#allocation3], 0  ;;  %21 = vadd.xlane.f32.xlu0 %v20_v2  ;;  %v23_v3 = vsel %vm19_vm0, %v16_v1, 0.0  ;;  %v81_v20 = vld [vmem:[%s168_s1] ss:$0 sm:$0xff]  ;;  %s114_s19 = smov [#allocation2]  }
   0x4   :  { %v82_v23 = vld [vmem:[%s169_s2] ss:$0 sm:$0xff]  ;;  %s70_s20 = sshll.u32 %s114_s19, 4  ;;  %s71_s20 = int_to_ptr.vmem [resolvable:$true] %s70_s20 }
   0x5   :  { %s90_s1 = scalar_lea.vmem %s71_s20, 256  ;;  %p95_p1 = scmp.lt.s32.totalorder %s71_s20, %s71_s20 }
   0x6   :  { %p91_p0 = scmp.ne.s32.totalorder %s71_s20, %s90_s1  ;;  %p96_p2 = scmp.lt.s32.totalorder %s90_s1, %s90_s1 }
   0x7   :  { %24 = vadd.xlane.f32.xlu0 %v23_v3 }
   0x8   :  { %p97_p3 = por %p96_p2, %p95_p1 }
   0xa   :  { %p98_p4 = pnand %p97_p3, %p91_p0 }
  0x90   :  { %v22_v4 = vpop.xlane.xlu0 %21 }
  0x91   :  { %v27_v5 = vmul.f32 0.03125, %v22_v4 }
  0x93   :  { %v29_v6 = vsub.f32 %v15_v0, %v27_v5 }
  0x94   :  { %v25_v7 = vpop.xlane.xlu0 %24 }
  0x95   :  { %v28_v8 = vmul.f32 0.03125, %v25_v7  ;;  %v31_v9 = vmul.f32 %v29_v6, %v29_v6  ;;  %v47_v21 = vmul.f32 %v81_v20, %v29_v6 }
  0x97   :  { %v30_v10 = vsub.f32 %v16_v1, %v28_v8  ;;  %v33_v11 = vsel %vm19_vm0, %v31_v9, 0.0 }
  0x98   :  { %34 = vadd.xlane.f32.xlu1 %v33_v11 }
  0x99   :  { %v32_v12 = vmul.f32 %v30_v10, %v30_v10  ;;  %v48_v25 = vmul.f32 %v81_v20, %v30_v10 }
  0x9b   :  { %v36_v13 = vsel %vm19_vm0, %v32_v12, 0.0 }
  0x9c   :  { %37 = vadd.xlane.f32.xlu1 %v36_v13 }
 0x125   :  { %v35_v14 = vpop.xlane.xlu1 %34 }
 0x126   :  { %v39_v15 = vmul.f32 0.03125, %v35_v14 }
 0x128   :  { %v49_v16 = vadd.f32 1e-06, %v39_v15 }
 0x129   :  { %v38_v17 = vpop.xlane.xlu1 %37 }
 0x12a   :  { %86 = vrsqrt.f32 %v49_v16  ;;  %v40_v18 = vmul.f32 0.03125, %v38_v17 }
 0x12c   :  { %v50_v19 = vadd.f32 1e-06, %v40_v18 }
 0x12e   :  { %88 = vrsqrt.f32 %v50_v19 }
 0x134   :  { %v87_v22 = vpop.eup %86 }
 0x135   :  { %v53_v24 = vmul.f32 %v87_v22, %v47_v21 }
 0x137   :  { %v61_v26 = vadd.f32 %v82_v23, %v53_v24 }
 0x138   :  { %v89_v27 = vpop.eup %88 }
 0x139   :  { %v54_v28 = vmul.f32 %v89_v27, %v48_v25  ;;  %63 = vst.msk [vmem:[#allocation2] sm:$0xff] %vm19_vm0, %v61_v26 }
 0x13b   :  { %v62_v29 = vadd.f32 %v82_v23, %v54_v28 }
 0x13d   :  { %64 = vst.msk [vmem:[#allocation2 + $0x8] sm:$0xff] %vm19_vm0, %v62_v29 }
 0x13e   :  { %101 = shalt.err (!%p98_p4)
}
 0x13f   :  { %s102_s22 = scalar_lea.hbm %s170_s3, 256 }
 0x140   :  { %p103_p5 = scmp.ne.s32.totalorder %s170_s3, %s102_s22  ;;  %p106_p6 = scmp.lt.u32.totalorder %s102_s22, %s170_s3 }
 0x142   :  { %p108_p7 = pnand %p106_p6, %p103_p5 }
 0x144   :  { %111 = shalt.err (!%p108_p7)
}
 0x145   :  { %s115_s27 = smov 128   ;;  %s116_s28 = smov 8  }
 0x146   :  { %76 = dma.vmem_to_hbm [thread:$0]  %s71_s20, 256, %s170_s3, [#allocation3], %s115_s27, %s115_s27, %s116_s28  }
 0x147   :  { %112 = dma.done.wait [#allocation3], 256  }
 0x148   :  { %113 = vsyncadd [#allocation3], 4294967040 }
 0x149   :  { %80 = vsyncpa [#allocation3], 1 }

</bundles_post_ra>
